<compile_context>
chip_gen: v7x
topology: tpu7x:2x2x1
jax: 0.10.0
libtpu: 0.0.40
codegen_flags: <defaults>
</compile_context>

<pallas_src>
import jax
import jax.numpy as jnp
import numpy as np
from jax import lax
from jax.experimental import pallas as pl
from jax.experimental.pallas import tpu as pltpu

EPS = 1e-5


# ----------------------------------------------------------------------------
# Architecture metadata
# ----------------------------------------------------------------------------
def _arch_metas(H, W):
    enc_ch, enc_st = [1, 4, 16, 32, 64], [2, 2, 1, 1]
    dec_ch, dec_st, dec_op = [64, 32, 16, 4, 1], [1, 1, 2, 2], [0, 0, 0, 1]
    metas, h, w = [], H, W
    for i in range(4):
        s = enc_st[i]
        ho, wo = (h - 3) // s + 1, (w - 3) // s + 1
        metas.append(dict(kind="conv", cin=enc_ch[i], cout=enc_ch[i + 1],
                          s=s, op=0, hi=h, wi=w, ho=ho, wo=wo))
        h, w = ho, wo
    for i in range(4):
        s, op = dec_st[i], dec_op[i]
        ho, wo = s * (h - 1) + 3 + op, s * (w - 1) + 3 + op
        metas.append(dict(kind="convT", cin=dec_ch[i], cout=dec_ch[i + 1],
                          s=s, op=op, hi=h, wi=w, ho=ho, wo=wo))
        h, w = ho, wo
    return metas


# ----------------------------------------------------------------------------
# One-time host precompute: banded tap weights + folded BN/bias scale/shift
# ----------------------------------------------------------------------------
def prepare_params(params, H=28, W=28):
    metas = _arch_metas(H, W)
    layers = []
    for m, p in zip(metas, params["enc"] + params["dec"]):
        cin, cout, s = m["cin"], m["cout"], m["s"]
        K, N = m["wi"] * cin, m["wo"] * cout
        w = np.asarray(p["w"], np.float32)
        wb = np.zeros((3, K, N), np.float32)     # 3 vertical taps, banded over columns
        if m["kind"] == "conv":
            # out[o, wo, co] += in[s*o + d, s*wo + j, ci] * w[co, ci, d, j]
            for d in range(3):
                for wo_ in range(m["wo"]):
                    for j in range(3):
                        wi_ = s * wo_ + j
                        wb[d, wi_ * cin:(wi_ + 1) * cin,
                           wo_ * cout:(wo_ + 1) * cout] = w[:, :, d, j].T
        else:
            # out[s*t + d, s*wi + e, co] += in[t, wi, ci] * w[ci, co, d, e]
            for d in range(3):
                for wi_ in range(m["wi"]):
                    for e in range(3):
                        wo_ = s * wi_ + e
                        if wo_ < m["wo"]:
                            wb[d, wi_ * cin:(wi_ + 1) * cin,
                               wo_ * cout:(wo_ + 1) * cout] = w[:, :, d, e]
        inv = np.asarray(p["gamma"]) / np.sqrt(np.asarray(p["rvar"]) + EPS)
        scale = np.tile(inv, m["wo"])
        shift = np.tile(np.asarray(p["beta"])
                        + (np.asarray(p["b"]) - np.asarray(p["rmean"])) * inv, m["wo"])
        layers.append(dict(
            w=jnp.asarray(wb, dtype=jnp.bfloat16),
            ss=jnp.asarray(np.stack([scale, shift]).reshape(2, 1, N), jnp.float32)))
    return layers


# ----------------------------------------------------------------------------
# Fused whole-network Pallas kernel (one grid step = one batch tile of TB images)
# ----------------------------------------------------------------------------
def _make_kernel(metas):
    n_layers = len(metas)

    def kernel(*refs):
        # refs = [x, (w, ss) * 8, emb_out, rec_out]
        #   x  : (H0, TB, W0*C0) f32   rows of pixels; batch folded into sublane dim
        #   w  : (3, K, N)        bf16 banded tap weights (K = Wi*Ci, N = Wo*Co)
        #   ss : (2, 1, N)        f32  BN scale / shift (conv bias folded in)
        x_ref = refs[0]
        emb_ref, rec_ref = refs[-2], refs[-1]

        h = x_ref[...]                       # (H_in, TB, W_in*C_in) f32
        tb = h.shape[1]

        def matmul(g, w2):                   # (R, TB, K) bf16 x (K, N) bf16 -> f32
            r = g.shape[0]
            out = jnp.dot(g.reshape(r * tb, g.shape[2]), w2,
                          preferred_element_type=jnp.float32)
            return out.reshape(r, tb, w2.shape[1])

        for li, m in enumerate(metas):
            w_ref, ss_ref = refs[1 + 2 * li], refs[2 + 2 * li]
            s, hi, ho = m["s"], m["hi"], m["ho"]
            k, n = m["wi"] * m["cin"], m["wo"] * m["cout"]
            hb = h.astype(jnp.bfloat16)      # bf16 MXU operands, f32 accumulation

            def zrows(cnt, dtype=jnp.float32, lanes=n):
                return jnp.zeros((cnt, tb, lanes), dtype)

            def shift(a, before, after):     # place rows by zero-padded row shifts
                parts = ([zrows(before)] if before else []) + [a] \
                        + ([zrows(after)] if after else [])
                return jnp.concatenate(parts, axis=0) if len(parts) > 1 else a

            if m["kind"] == "conv":
                # Row gather for the 3 vertical taps: plain leading-dim slices;
                # stride 2 via an even/odd leading-dim split (no 0/1 sel matmuls).
                if s == 1:
                    g = [hb[d:d + ho] for d in range(3)]
                else:
                    hp = hb if hi % 2 == 0 else jnp.concatenate(
                        [hb, zrows(1, jnp.bfloat16, k)], axis=0)
                    hp = hp.reshape(-1, 2, tb, k)
                    even_r, odd_r = hp[:, 0], hp[:, 1]
                    g = [even_r[:ho], odd_r[:ho], even_r[1:1 + ho]]
                pre = (matmul(g[0], w_ref[0]) + matmul(g[1], w_ref[1])
                       + matmul(g[2], w_ref[2]))
            else:
                # Transposed conv: matmul every input row once per tap, then scatter
                # to output rows s*t + d via zero-padded row shifts (output_padding
                # rows are never written and stay exactly zero).
                a0, a1, a2 = (matmul(hb, w_ref[d]) for d in range(3))
                if s == 1:
                    pre = shift(a0, 0, 2) + shift(a1, 1, 1) + shift(a2, 2, 0)
                else:
                    he, hd = (ho + 1) // 2, ho // 2       # even / odd output rows
                    even_o = shift(a0, 0, he - hi) + shift(a2, 1, he - hi - 1)
                    odd_o = shift(a1, 0, hd - hi)
                    if hd < he:
                        odd_o = jnp.concatenate([odd_o, zrows(he - hd)], axis=0)
                    pre = jnp.concatenate([even_o[:, None], odd_o[:, None]], axis=1)
                    pre = pre.reshape(2 * he, tb, n)[:ho]
            # fused eval-BatchNorm (+ conv bias) + ReLU epilogue, strictly f32
            h = jnp.maximum(pre * ss_ref[0] + ss_ref[1], 0.0)
            if li == n_layers // 2 - 1:
                emb_ref[...] = h             # encoder output (embedding)
        rec_ref[...] = h                     # reconstruction

    return kernel


# ----------------------------------------------------------------------------
# Forward wrapper (one pallas_call for the whole network)
# ----------------------------------------------------------------------------
def _const_idx(ndim):
    def idx(b):
        return (0,) * ndim
    return idx


def _pick_tb(batch, tb_max=128):
    def up8(v):
        return -(-v // 8) * 8
    b8 = up8(batch)
    if b8 > tb_max:
        return tb_max
    if b8 >= 16:          # keep >= 2 grid steps so v7x megacore feeds both cores
        return up8(b8 // 2)
    return b8


def ae_forward(layers, x_nchw, tb_max=128):
    """Returns (emb, reconstruction) matching PyTorch AEModel.forward (eval mode)."""
    B, C, H, W = x_nchw.shape
    metas = _arch_metas(H, W)
    me, mr = metas[len(metas) // 2 - 1], metas[-1]
    eH, eN = me["ho"], me["wo"] * me["cout"]
    rH, rN = mr["ho"], mr["wo"] * mr["cout"]

    TB = _pick_tb(B, tb_max)                 # batch tile (multiple of 8)
    Bp = -(-B // TB) * TB                    # pad batch to a multiple of TB

    # NCHW -> (H, B, W*C): pixel rows with batch folded into the sublane (M) dim.
    if C == 1:
        x_r = x_nchw.reshape(B, H, W).astype(jnp.float32)        # pure reshape
    else:
        x_r = jnp.transpose(x_nchw.astype(jnp.float32),
                            (0, 2, 3, 1)).reshape(B, H, W * C)
    if Bp != B:
        x_r = jnp.concatenate(
            [x_r, jnp.zeros((Bp - B, H, W * C), jnp.float32)], axis=0)
    x_rows = jnp.transpose(x_r, (1, 0, 2))                        # (H, Bp, W*C)

    args = [x_rows]
    in_specs = [pl.BlockSpec((H, TB, W * C), lambda b: (0, b, 0))]
    for layer in layers:
        for nm in ("w", "ss"):
            a = layer[nm]
            args.append(a)
            # Full-array constant blocks (constant index_map): DMA'd once, resident.
            in_specs.append(pl.BlockSpec(a.shape, _const_idx(a.ndim)))

    emb_rows, rec_rows = pl.pallas_call(
        _make_kernel(metas),
        out_shape=(jax.ShapeDtypeStruct((eH, Bp, eN), jnp.float32),
                   jax.ShapeDtypeStruct((rH, Bp, rN), jnp.float32)),
        grid=(Bp // TB,),
        in_specs=in_specs,
        out_specs=(pl.BlockSpec((eH, TB, eN), lambda b: (0, b, 0)),
                   pl.BlockSpec((rH, TB, rN), lambda b: (0, b, 0))),
        compiler_params=pltpu.CompilerParams(dimension_semantics=("parallel",)),
    )(*args)

    # (H, Bp, W*C) -> PyTorch layouts; drop batch padding.
    emb = jnp.transpose(emb_rows.reshape(eH, Bp, me["wo"], me["cout"]),
                        (1, 3, 0, 2)).reshape(Bp, -1)[:B]
    rec = jnp.transpose(rec_rows.reshape(rH, Bp, mr["wo"], mr["cout"]),
                        (1, 3, 0, 2))[:B]
    return emb, rec


# ----------------------------------------------------------------------------
# Parameters + pure-JAX reference (lax.conv) for a correctness cross-check
# ----------------------------------------------------------------------------
def init_params(key):
    enc_ch, enc_st = [1, 4, 16, 32, 64], [2, 2, 1, 1]
    dec_ch, dec_st, dec_op = [64, 32, 16, 4, 1], [1, 1, 2, 2], [0, 0, 0, 1]
    params = {"enc": [], "dec": []}
    for i in range(4):
        cin, cout = enc_ch[i], enc_ch[i + 1]
        key, k1, k2, k3, k4, k5, k6 = jax.random.split(key, 7)
        params["enc"].append(dict(
            w=0.1 * jax.random.normal(k1, (cout, cin, 3, 3), jnp.float32),
            b=0.1 * jax.random.normal(k2, (cout,), jnp.float32),
            gamma=1.0 + 0.1 * jax.random.normal(k3, (cout,), jnp.float32),
            beta=0.1 * jax.random.normal(k4, (cout,), jnp.float32),
            rmean=0.1 * jax.random.normal(k5, (cout,), jnp.float32),
            rvar=jnp.exp(0.1 * jax.random.normal(k6, (cout,), jnp.float32)),
            stride=enc_st[i]))
    for i in range(4):
        cin, cout = dec_ch[i], dec_ch[i + 1]
        key, k1, k2, k3, k4, k5, k6 = jax.random.split(key, 7)
        params["dec"].append(dict(
            w=0.1 * jax.random.normal(k1, (cin, cout, 3, 3), jnp.float32),
            b=0.1 * jax.random.normal(k2, (cout,), jnp.float32),
            gamma=1.0 + 0.1 * jax.random.normal(k3, (cout,), jnp.float32),
            beta=0.1 * jax.random.normal(k4, (cout,), jnp.float32),
            rmean=0.1 * jax.random.normal(k5, (cout,), jnp.float32),
            rvar=jnp.exp(0.1 * jax.random.normal(k6, (cout,), jnp.float32)),
            stride=dec_st[i],
            output_padding=dec_op[i]))
    return params


def _ref_forward(params, x_nchw):
    """Pure-JAX reference with the same bf16 rounding points as the kernel
    (weights + per-layer activations rounded to bf16, f32 accumulation/epilogue)."""
    def rnd(t):
        return t.astype(jnp.bfloat16).astype(jnp.float32)

    def bn_relu(z, p):
        inv = p["gamma"] / jnp.sqrt(p["rvar"] + EPS)
        z = (z + p["b"][None, :, None, None]) * inv[None, :, None, None] \
            + (p["beta"] - p["rmean"] * inv)[None, :, None, None]
        return jnp.maximum(z, 0.0)

    h = x_nchw.astype(jnp.float32)
    for p in params["enc"]:
        z = lax.conv_general_dilated(rnd(h), rnd(p["w"]), (p["stride"],) * 2, "VALID",
                                     dimension_numbers=("NCHW", "OIHW", "NCHW"))
        h = bn_relu(z, p)
    emb = h.reshape(h.shape[0], -1)
    for p in params["dec"]:
        k, op = 3, p["output_padding"]
        w_conv = jnp.transpose(p["w"][:, :, ::-1, ::-1], (1, 0, 2, 3))
        z = lax.conv_general_dilated(rnd(h), rnd(w_conv), (1, 1),
                                     [(k - 1, k - 1 + op), (k - 1, k - 1 + op)],
                                     lhs_dilation=(p["stride"],) * 2,
                                     dimension_numbers=("NCHW", "OIHW", "NCHW"))
        h = bn_relu(z, p)
    return emb, h


if __name__ == "__main__":
    key = jax.random.PRNGKey(0)
    pkey, xkey = jax.random.split(key)
    params = init_params(pkey)
    layers = prepare_params(params)          # one-time host precompute

    # MNIST-like input: batch=2, 1 channel, 28x28 (NCHW like the PyTorch module)
    x = jax.random.normal(xkey, (2, 1, 28, 28), jnp.float32)

    fwd = jax.jit(ae_forward)
    emb, rec = fwd(layers, x)
    emb = jax.block_until_ready(emb)
    rec = jax.block_until_ready(rec)

    assert emb.shape == (2, 64 * 2 * 2), emb.shape
    assert rec.shape == (2, 1, 28, 28), rec.shape

    emb_ref, rec_ref = _ref_forward(params, x)
    assert jnp.allclose(emb, emb_ref, rtol=2e-2, atol=2e-2), \
        float(jnp.max(jnp.abs(emb - emb_ref)))
    assert jnp.allclose(rec, rec_ref, rtol=2e-2, atol=2e-2), \
        float(jnp.max(jnp.abs(rec - rec_ref)))

    print("KERNEL_OK")
</pallas_src>

<mosaic_0001>
module attributes {stable_mosaic.version = 11 : i64} {
  func.func @kernel(%arg0: i32, %arg1: memref<28x8x28xf32, #tpu.memory_space<vmem>>, %arg2: memref<3x28x52xbf16, #tpu.memory_space<vmem>>, %arg3: memref<2x1x52xf32, #tpu.memory_space<vmem>>, %arg4: memref<3x52x96xbf16, #tpu.memory_space<vmem>>, %arg5: memref<2x1x96xf32, #tpu.memory_space<vmem>>, %arg6: memref<3x96x128xbf16, #tpu.memory_space<vmem>>, %arg7: memref<2x1x128xf32, #tpu.memory_space<vmem>>, %arg8: memref<3x128x128xbf16, #tpu.memory_space<vmem>>, %arg9: memref<2x1x128xf32, #tpu.memory_space<vmem>>, %arg10: memref<3x128x128xbf16, #tpu.memory_space<vmem>>, %arg11: memref<2x1x128xf32, #tpu.memory_space<vmem>>, %arg12: memref<3x128x96xbf16, #tpu.memory_space<vmem>>, %arg13: memref<2x1x96xf32, #tpu.memory_space<vmem>>, %arg14: memref<3x96x52xbf16, #tpu.memory_space<vmem>>, %arg15: memref<2x1x52xf32, #tpu.memory_space<vmem>>, %arg16: memref<3x52x28xbf16, #tpu.memory_space<vmem>>, %arg17: memref<2x1x28xf32, #tpu.memory_space<vmem>>, %arg18: memref<2x8x128xf32, #tpu.memory_space<vmem>>, %arg19: memref<28x8x28xf32, #tpu.memory_space<vmem>>) attributes {dimension_semantics = [#tpu.dimension_semantics<parallel>], iteration_bounds = array<i64: 1>, scalar_prefetch = 0 : i64, scratch_operands = 0 : i64, tpu.core_type = #tpu.core_type<tc>, window_params = [{transform_indices = @transform_0, window_bounds = array<i64: 28, 8, 28>}, {pipeline_mode = #tpu.pipeline_mode<synchronous>, transform_indices = @transform_1, window_bounds = array<i64: 3, 28, 52>}, {pipeline_mode = #tpu.pipeline_mode<synchronous>, transform_indices = @transform_2, window_bounds = array<i64: 2, 1, 52>}, {pipeline_mode = #tpu.pipeline_mode<synchronous>, transform_indices = @transform_3, window_bounds = array<i64: 3, 52, 96>}, {pipeline_mode = #tpu.pipeline_mode<synchronous>, transform_indices = @transform_4, window_bounds = array<i64: 2, 1, 96>}, {pipeline_mode = #tpu.pipeline_mode<synchronous>, transform_indices = @transform_5, window_bounds = array<i64: 3, 96, 128>}, {pipeline_mode = #tpu.pipeline_mode<synchronous>, transform_indices = @transform_6, window_bounds = array<i64: 2, 1, 128>}, {pipeline_mode = #tpu.pipeline_mode<synchronous>, transform_indices = @transform_7, window_bounds = array<i64: 3, 128, 128>}, {pipeline_mode = #tpu.pipeline_mode<synchronous>, transform_indices = @transform_8, window_bounds = array<i64: 2, 1, 128>}, {pipeline_mode = #tpu.pipeline_mode<synchronous>, transform_indices = @transform_9, window_bounds = array<i64: 3, 128, 128>}, {pipeline_mode = #tpu.pipeline_mode<synchronous>, transform_indices = @transform_10, window_bounds = array<i64: 2, 1, 128>}, {pipeline_mode = #tpu.pipeline_mode<synchronous>, transform_indices = @transform_11, window_bounds = array<i64: 3, 128, 96>}, {pipeline_mode = #tpu.pipeline_mode<synchronous>, transform_indices = @transform_12, window_bounds = array<i64: 2, 1, 96>}, {pipeline_mode = #tpu.pipeline_mode<synchronous>, transform_indices = @transform_13, window_bounds = array<i64: 3, 96, 52>}, {pipeline_mode = #tpu.pipeline_mode<synchronous>, transform_indices = @transform_14, window_bounds = array<i64: 2, 1, 52>}, {pipeline_mode = #tpu.pipeline_mode<synchronous>, transform_indices = @transform_15, window_bounds = array<i64: 3, 52, 28>}, {pipeline_mode = #tpu.pipeline_mode<synchronous>, transform_indices = @transform_16, window_bounds = array<i64: 2, 1, 28>}, {transform_indices = @transform_17, window_bounds = array<i64: 2, 8, 128>}, {transform_indices = @transform_18, window_bounds = array<i64: 28, 8, 28>}]} {
    %c0 = arith.constant 0 : index
    %c0_0 = arith.constant 0 : index
    %c0_1 = arith.constant 0 : index
    %0 = vector.load %arg1[%c0, %c0_0, %c0_1] : memref<28x8x28xf32, #tpu.memory_space<vmem>>, vector<28x8x28xf32>
    %1 = arith.truncf %0 : vector<28x8x28xf32> to vector<28x8x28xbf16>
    %2 = vector.shape_cast %1 : vector<28x8x28xbf16> to vector<14x2x8x28xbf16>
    %3 = vector.extract_strided_slice %2 {offsets = [0, 0, 0, 0], sizes = [14, 1, 8, 28], strides = [1, 1, 1, 1]} : vector<14x2x8x28xbf16> to vector<14x1x8x28xbf16>
    %4 = vector.shape_cast %3 : vector<14x1x8x28xbf16> to vector<14x8x28xbf16>
    %5 = vector.extract_strided_slice %2 {offsets = [0, 1, 0, 0], sizes = [14, 1, 8, 28], strides = [1, 1, 1, 1]} : vector<14x2x8x28xbf16> to vector<14x1x8x28xbf16>
    %6 = vector.shape_cast %5 : vector<14x1x8x28xbf16> to vector<14x8x28xbf16>
    %7 = vector.extract_strided_slice %4 {offsets = [0, 0, 0], sizes = [13, 8, 28], strides = [1, 1, 1]} : vector<14x8x28xbf16> to vector<13x8x28xbf16>
    %8 = vector.extract_strided_slice %6 {offsets = [0, 0, 0], sizes = [13, 8, 28], strides = [1, 1, 1]} : vector<14x8x28xbf16> to vector<13x8x28xbf16>
    %9 = vector.extract_strided_slice %4 {offsets = [1, 0, 0], sizes = [13, 8, 28], strides = [1, 1, 1]} : vector<14x8x28xbf16> to vector<13x8x28xbf16>
    %c0_2 = arith.constant 0 : index
    %c0_3 = arith.constant 0 : index
    %c0_4 = arith.constant 0 : index
    %10 = vector.load %arg2[%c0_2, %c0_3, %c0_4] : memref<3x28x52xbf16, #tpu.memory_space<vmem>>, vector<1x28x52xbf16>
    %11 = vector.shape_cast %10 : vector<1x28x52xbf16> to vector<28x52xbf16>
    %12 = vector.shape_cast %7 : vector<13x8x28xbf16> to vector<104x28xbf16>
    %cst = arith.constant dense<0.000000e+00> : vector<104x52xf32>
    %13 = tpu.matmul %12, %11, %cst {dimension_numbers = #tpu.dot_dimension_numbers<[1], [0], [0], [1], [0, 0, 1, 1], [], []>} : vector<104x28xbf16>, vector<28x52xbf16>, vector<104x52xf32> -> vector<104x52xf32>
    %14 = vector.shape_cast %13 : vector<104x52xf32> to vector<13x8x52xf32>
    %c1 = arith.constant 1 : index
    %c0_5 = arith.constant 0 : index
    %c0_6 = arith.constant 0 : index
    %15 = vector.load %arg2[%c1, %c0_5, %c0_6] : memref<3x28x52xbf16, #tpu.memory_space<vmem>>, vector<1x28x52xbf16>
    %16 = vector.shape_cast %15 : vector<1x28x52xbf16> to vector<28x52xbf16>
    %17 = vector.shape_cast %8 : vector<13x8x28xbf16> to vector<104x28xbf16>
    %cst_7 = arith.constant dense<0.000000e+00> : vector<104x52xf32>
    %18 = tpu.matmul %17, %16, %cst_7 {dimension_numbers = #tpu.dot_dimension_numbers<[1], [0], [0], [1], [0, 0, 1, 1], [], []>} : vector<104x28xbf16>, vector<28x52xbf16>, vector<104x52xf32> -> vector<104x52xf32>
    %19 = vector.shape_cast %18 : vector<104x52xf32> to vector<13x8x52xf32>
    %20 = arith.addf %14, %19 : vector<13x8x52xf32>
    %c2 = arith.constant 2 : index
    %c0_8 = arith.constant 0 : index
    %c0_9 = arith.constant 0 : index
    %21 = vector.load %arg2[%c2, %c0_8, %c0_9] : memref<3x28x52xbf16, #tpu.memory_space<vmem>>, vector<1x28x52xbf16>
    %22 = vector.shape_cast %21 : vector<1x28x52xbf16> to vector<28x52xbf16>
    %23 = vector.shape_cast %9 : vector<13x8x28xbf16> to vector<104x28xbf16>
    %cst_10 = arith.constant dense<0.000000e+00> : vector<104x52xf32>
    %24 = tpu.matmul %23, %22, %cst_10 {dimension_numbers = #tpu.dot_dimension_numbers<[1], [0], [0], [1], [0, 0, 1, 1], [], []>} : vector<104x28xbf16>, vector<28x52xbf16>, vector<104x52xf32> -> vector<104x52xf32>
    %25 = vector.shape_cast %24 : vector<104x52xf32> to vector<13x8x52xf32>
    %26 = arith.addf %20, %25 : vector<13x8x52xf32>
    %c0_11 = arith.constant 0 : index
    %c0_12 = arith.constant 0 : index
    %c0_13 = arith.constant 0 : index
    %27 = vector.load %arg3[%c0_11, %c0_12, %c0_13] : memref<2x1x52xf32, #tpu.memory_space<vmem>>, vector<1x1x52xf32>
    %28 = vector.shape_cast %27 : vector<1x1x52xf32> to vector<1x52xf32>
    %29 = vector.shape_cast %28 : vector<1x52xf32> to vector<1x1x52xf32>
    %30 = vector.broadcast %29 : vector<1x1x52xf32> to vector<13x8x52xf32>
    %31 = arith.mulf %26, %30 : vector<13x8x52xf32>
    %c1_14 = arith.constant 1 : index
    %c0_15 = arith.constant 0 : index
    %c0_16 = arith.constant 0 : index
    %32 = vector.load %arg3[%c1_14, %c0_15, %c0_16] : memref<2x1x52xf32, #tpu.memory_space<vmem>>, vector<1x1x52xf32>
    %33 = vector.shape_cast %32 : vector<1x1x52xf32> to vector<1x52xf32>
    %34 = vector.shape_cast %33 : vector<1x52xf32> to vector<1x1x52xf32>
    %35 = vector.broadcast %34 : vector<1x1x52xf32> to vector<13x8x52xf32>
    %36 = arith.addf %31, %35 : vector<13x8x52xf32>
    %cst_17 = arith.constant 0.000000e+00 : f32
    %37 = vector.broadcast %cst_17 : f32 to vector<13x8x52xf32>
    %38 = arith.maximumf %36, %37 : vector<13x8x52xf32>
    %39 = arith.truncf %38 : vector<13x8x52xf32> to vector<13x8x52xbf16>
    %cst_18 = arith.constant 0.000000e+00 : bf16
    %40 = vector.broadcast %cst_18 : bf16 to vector<1x8x52xbf16>
    %41 = tpu.concatenate %39, %40 in 0 : vector<13x8x52xbf16>, vector<1x8x52xbf16> -> vector<14x8x52xbf16>
    %42 = vector.shape_cast %41 : vector<14x8x52xbf16> to vector<7x2x8x52xbf16>
    %43 = vector.extract_strided_slice %42 {offsets = [0, 0, 0, 0], sizes = [7, 1, 8, 52], strides = [1, 1, 1, 1]} : vector<7x2x8x52xbf16> to vector<7x1x8x52xbf16>
    %44 = vector.shape_cast %43 : vector<7x1x8x52xbf16> to vector<7x8x52xbf16>
    %45 = vector.extract_strided_slice %42 {offsets = [0, 1, 0, 0], sizes = [7, 1, 8, 52], strides = [1, 1, 1, 1]} : vector<7x2x8x52xbf16> to vector<7x1x8x52xbf16>
    %46 = vector.shape_cast %45 : vector<7x1x8x52xbf16> to vector<7x8x52xbf16>
    %47 = vector.extract_strided_slice %44 {offsets = [0, 0, 0], sizes = [6, 8, 52], strides = [1, 1, 1]} : vector<7x8x52xbf16> to vector<6x8x52xbf16>
    %48 = vector.extract_strided_slice %46 {offsets = [0, 0, 0], sizes = [6, 8, 52], strides = [1, 1, 1]} : vector<7x8x52xbf16> to vector<6x8x52xbf16>
    %49 = vector.extract_strided_slice %44 {offsets = [1, 0, 0], sizes = [6, 8, 52], strides = [1, 1, 1]} : vector<7x8x52xbf16> to vector<6x8x52xbf16>
    %c0_19 = arith.constant 0 : index
    %c0_20 = arith.constant 0 : index
    %c0_21 = arith.constant 0 : index
    %50 = vector.load %arg4[%c0_19, %c0_20, %c0_21] : memref<3x52x96xbf16, #tpu.memory_space<vmem>>, vector<1x52x96xbf16>
    %51 = vector.shape_cast %50 : vector<1x52x96xbf16> to vector<52x96xbf16>
    %52 = vector.shape_cast %47 : vector<6x8x52xbf16> to vector<48x52xbf16>
    %cst_22 = arith.constant dense<0.000000e+00> : vector<48x96xf32>
    %53 = tpu.matmul %52, %51, %cst_22 {dimension_numbers = #tpu.dot_dimension_numbers<[1], [0], [0], [1], [0, 0, 1, 1], [], []>} : vector<48x52xbf16>, vector<52x96xbf16>, vector<48x96xf32> -> vector<48x96xf32>
    %54 = vector.shape_cast %53 : vector<48x96xf32> to vector<6x8x96xf32>
    %c1_23 = arith.constant 1 : index
    %c0_24 = arith.constant 0 : index
    %c0_25 = arith.constant 0 : index
    %55 = vector.load %arg4[%c1_23, %c0_24, %c0_25] : memref<3x52x96xbf16, #tpu.memory_space<vmem>>, vector<1x52x96xbf16>
    %56 = vector.shape_cast %55 : vector<1x52x96xbf16> to vector<52x96xbf16>
    %57 = vector.shape_cast %48 : vector<6x8x52xbf16> to vector<48x52xbf16>
    %cst_26 = arith.constant dense<0.000000e+00> : vector<48x96xf32>
    %58 = tpu.matmul %57, %56, %cst_26 {dimension_numbers = #tpu.dot_dimension_numbers<[1], [0], [0], [1], [0, 0, 1, 1], [], []>} : vector<48x52xbf16>, vector<52x96xbf16>, vector<48x96xf32> -> vector<48x96xf32>
    %59 = vector.shape_cast %58 : vector<48x96xf32> to vector<6x8x96xf32>
    %60 = arith.addf %54, %59 : vector<6x8x96xf32>
    %c2_27 = arith.constant 2 : index
    %c0_28 = arith.constant 0 : index
    %c0_29 = arith.constant 0 : index
    %61 = vector.load %arg4[%c2_27, %c0_28, %c0_29] : memref<3x52x96xbf16, #tpu.memory_space<vmem>>, vector<1x52x96xbf16>
    %62 = vector.shape_cast %61 : vector<1x52x96xbf16> to vector<52x96xbf16>
    %63 = vector.shape_cast %49 : vector<6x8x52xbf16> to vector<48x52xbf16>
    %cst_30 = arith.constant dense<0.000000e+00> : vector<48x96xf32>
    %64 = tpu.matmul %63, %62, %cst_30 {dimension_numbers = #tpu.dot_dimension_numbers<[1], [0], [0], [1], [0, 0, 1, 1], [], []>} : vector<48x52xbf16>, vector<52x96xbf16>, vector<48x96xf32> -> vector<48x96xf32>
    %65 = vector.shape_cast %64 : vector<48x96xf32> to vector<6x8x96xf32>
    %66 = arith.addf %60, %65 : vector<6x8x96xf32>
    %c0_31 = arith.constant 0 : index
    %c0_32 = arith.constant 0 : index
    %c0_33 = arith.constant 0 : index
    %67 = vector.load %arg5[%c0_31, %c0_32, %c0_33] : memref<2x1x96xf32, #tpu.memory_space<vmem>>, vector<1x1x96xf32>
    %68 = vector.shape_cast %67 : vector<1x1x96xf32> to vector<1x96xf32>
    %69 = vector.shape_cast %68 : vector<1x96xf32> to vector<1x1x96xf32>
    %70 = vector.broadcast %69 : vector<1x1x96xf32> to vector<6x8x96xf32>
    %71 = arith.mulf %66, %70 : vector<6x8x96xf32>
    %c1_34 = arith.constant 1 : index
    %c0_35 = arith.constant 0 : index
    %c0_36 = arith.constant 0 : index
    %72 = vector.load %arg5[%c1_34, %c0_35, %c0_36] : memref<2x1x96xf32, #tpu.memory_space<vmem>>, vector<1x1x96xf32>
    %73 = vector.shape_cast %72 : vector<1x1x96xf32> to vector<1x96xf32>
    %74 = vector.shape_cast %73 : vector<1x96xf32> to vector<1x1x96xf32>
    %75 = vector.broadcast %74 : vector<1x1x96xf32> to vector<6x8x96xf32>
    %76 = arith.addf %71, %75 : vector<6x8x96xf32>
    %cst_37 = arith.constant 0.000000e+00 : f32
    %77 = vector.broadcast %cst_37 : f32 to vector<6x8x96xf32>
    %78 = arith.maximumf %76, %77 : vector<6x8x96xf32>
    %79 = arith.truncf %78 : vector<6x8x96xf32> to vector<6x8x96xbf16>
    %80 = vector.extract_strided_slice %79 {offsets = [0, 0, 0], sizes = [4, 8, 96], strides = [1, 1, 1]} : vector<6x8x96xbf16> to vector<4x8x96xbf16>
    %81 = vector.extract_strided_slice %79 {offsets = [1, 0, 0], sizes = [4, 8, 96], strides = [1, 1, 1]} : vector<6x8x96xbf16> to vector<4x8x96xbf16>
    %82 = vector.extract_strided_slice %79 {offsets = [2, 0, 0], sizes = [4, 8, 96], strides = [1, 1, 1]} : vector<6x8x96xbf16> to vector<4x8x96xbf16>
    %c0_38 = arith.constant 0 : index
    %c0_39 = arith.constant 0 : index
    %c0_40 = arith.constant 0 : index
    %83 = vector.load %arg6[%c0_38, %c0_39, %c0_40] : memref<3x96x128xbf16, #tpu.memory_space<vmem>>, vector<1x96x128xbf16>
    %84 = vector.shape_cast %83 : vector<1x96x128xbf16> to vector<96x128xbf16>
    %85 = vector.shape_cast %80 : vector<4x8x96xbf16> to vector<32x96xbf16>
    %cst_41 = arith.constant dense<0.000000e+00> : vector<32x128xf32>
    %86 = tpu.matmul %85, %84, %cst_41 {dimension_numbers = #tpu.dot_dimension_numbers<[1], [0], [0], [1], [0, 0, 1, 1], [], []>} : vector<32x96xbf16>, vector<96x128xbf16>, vector<32x128xf32> -> vector<32x128xf32>
    %87 = vector.shape_cast %86 : vector<32x128xf32> to vector<4x8x128xf32>
    %c1_42 = arith.constant 1 : index
    %c0_43 = arith.constant 0 : index
    %c0_44 = arith.constant 0 : index
    %88 = vector.load %arg6[%c1_42, %c0_43, %c0_44] : memref<3x96x128xbf16, #tpu.memory_space<vmem>>, vector<1x96x128xbf16>
    %89 = vector.shape_cast %88 : vector<1x96x128xbf16> to vector<96x128xbf16>
    %90 = vector.shape_cast %81 : vector<4x8x96xbf16> to vector<32x96xbf16>
    %cst_45 = arith.constant dense<0.000000e+00> : vector<32x128xf32>
    %91 = tpu.matmul %90, %89, %cst_45 {dimension_numbers = #tpu.dot_dimension_numbers<[1], [0], [0], [1], [0, 0, 1, 1], [], []>} : vector<32x96xbf16>, vector<96x128xbf16>, vector<32x128xf32> -> vector<32x128xf32>
    %92 = vector.shape_cast %91 : vector<32x128xf32> to vector<4x8x128xf32>
    %93 = arith.addf %87, %92 : vector<4x8x128xf32>
    %c2_46 = arith.constant 2 : index
    %c0_47 = arith.constant 0 : index
    %c0_48 = arith.constant 0 : index
    %94 = vector.load %arg6[%c2_46, %c0_47, %c0_48] : memref<3x96x128xbf16, #tpu.memory_space<vmem>>, vector<1x96x128xbf16>
    %95 = vector.shape_cast %94 : vector<1x96x128xbf16> to vector<96x128xbf16>
    %96 = vector.shape_cast %82 : vector<4x8x96xbf16> to vector<32x96xbf16>
    %cst_49 = arith.constant dense<0.000000e+00> : vector<32x128xf32>
    %97 = tpu.matmul %96, %95, %cst_49 {dimension_numbers = #tpu.dot_dimension_numbers<[1], [0], [0], [1], [0, 0, 1, 1], [], []>} : vector<32x96xbf16>, vector<96x128xbf16>, vector<32x128xf32> -> vector<32x128xf32>
    %98 = vector.shape_cast %97 : vector<32x128xf32> to vector<4x8x128xf32>
    %99 = arith.addf %93, %98 : vector<4x8x128xf32>
    %c0_50 = arith.constant 0 : index
    %c0_51 = arith.constant 0 : index
    %c0_52 = arith.constant 0 : index
    %100 = vector.load %arg7[%c0_50, %c0_51, %c0_52] : memref<2x1x128xf32, #tpu.memory_space<vmem>>, vector<1x1x128xf32>
    %101 = vector.shape_cast %100 : vector<1x1x128xf32> to vector<1x128xf32>
    %102 = vector.shape_cast %101 : vector<1x128xf32> to vector<1x1x128xf32>
    %103 = vector.broadcast %102 : vector<1x1x128xf32> to vector<4x8x128xf32>
    %104 = arith.mulf %99, %103 : vector<4x8x128xf32>
    %c1_53 = arith.constant 1 : index
    %c0_54 = arith.constant 0 : index
    %c0_55 = arith.constant 0 : index
    %105 = vector.load %arg7[%c1_53, %c0_54, %c0_55] : memref<2x1x128xf32, #tpu.memory_space<vmem>>, vector<1x1x128xf32>
    %106 = vector.shape_cast %105 : vector<1x1x128xf32> to vector<1x128xf32>
    %107 = vector.shape_cast %106 : vector<1x128xf32> to vector<1x1x128xf32>
    %108 = vector.broadcast %107 : vector<1x1x128xf32> to vector<4x8x128xf32>
    %109 = arith.addf %104, %108 : vector<4x8x128xf32>
    %cst_56 = arith.constant 0.000000e+00 : f32
    %110 = vector.broadcast %cst_56 : f32 to vector<4x8x128xf32>
    %111 = arith.maximumf %109, %110 : vector<4x8x128xf32>
    %112 = arith.truncf %111 : vector<4x8x128xf32> to vector<4x8x128xbf16>
    %113 = vector.extract_strided_slice %112 {offsets = [0, 0, 0], sizes = [2, 8, 128], strides = [1, 1, 1]} : vector<4x8x128xbf16> to vector<2x8x128xbf16>
    %114 = vector.extract_strided_slice %112 {offsets = [1, 0, 0], sizes = [2, 8, 128], strides = [1, 1, 1]} : vector<4x8x128xbf16> to vector<2x8x128xbf16>
    %115 = vector.extract_strided_slice %112 {offsets = [2, 0, 0], sizes = [2, 8, 128], strides = [1, 1, 1]} : vector<4x8x128xbf16> to vector<2x8x128xbf16>
    %c0_57 = arith.constant 0 : index
    %c0_58 = arith.constant 0 : index
    %c0_59 = arith.constant 0 : index
    %116 = vector.load %arg8[%c0_57, %c0_58, %c0_59] : memref<3x128x128xbf16, #tpu.memory_space<vmem>>, vector<1x128x128xbf16>
    %117 = vector.shape_cast %116 : vector<1x128x128xbf16> to vector<128x128xbf16>
    %118 = vector.shape_cast %113 : vector<2x8x128xbf16> to vector<16x128xbf16>
    %cst_60 = arith.constant dense<0.000000e+00> : vector<16x128xf32>
    %119 = tpu.matmul %118, %117, %cst_60 {dimension_numbers = #tpu.dot_dimension_numbers<[1], [0], [0], [1], [0, 0, 1, 1], [], []>} : vector<16x128xbf16>, vector<128x128xbf16>, vector<16x128xf32> -> vector<16x128xf32>
    %120 = vector.shape_cast %119 : vector<16x128xf32> to vector<2x8x128xf32>
    %c1_61 = arith.constant 1 : index
    %c0_62 = arith.constant 0 : index
    %c0_63 = arith.constant 0 : index
    %121 = vector.load %arg8[%c1_61, %c0_62, %c0_63] : memref<3x128x128xbf16, #tpu.memory_space<vmem>>, vector<1x128x128xbf16>
    %122 = vector.shape_cast %121 : vector<1x128x128xbf16> to vector<128x128xbf16>
    %123 = vector.shape_cast %114 : vector<2x8x128xbf16> to vector<16x128xbf16>
    %cst_64 = arith.constant dense<0.000000e+00> : vector<16x128xf32>
    %124 = tpu.matmul %123, %122, %cst_64 {dimension_numbers = #tpu.dot_dimension_numbers<[1], [0], [0], [1], [0, 0, 1, 1], [], []>} : vector<16x128xbf16>, vector<128x128xbf16>, vector<16x128xf32> -> vector<16x128xf32>
    %125 = vector.shape_cast %124 : vector<16x128xf32> to vector<2x8x128xf32>
    %126 = arith.addf %120, %125 : vector<2x8x128xf32>
    %c2_65 = arith.constant 2 : index
    %c0_66 = arith.constant 0 : index
    %c0_67 = arith.constant 0 : index
    %127 = vector.load %arg8[%c2_65, %c0_66, %c0_67] : memref<3x128x128xbf16, #tpu.memory_space<vmem>>, vector<1x128x128xbf16>
    %128 = vector.shape_cast %127 : vector<1x128x128xbf16> to vector<128x128xbf16>
    %129 = vector.shape_cast %115 : vector<2x8x128xbf16> to vector<16x128xbf16>
    %cst_68 = arith.constant dense<0.000000e+00> : vector<16x128xf32>
    %130 = tpu.matmul %129, %128, %cst_68 {dimension_numbers = #tpu.dot_dimension_numbers<[1], [0], [0], [1], [0, 0, 1, 1], [], []>} : vector<16x128xbf16>, vector<128x128xbf16>, vector<16x128xf32> -> vector<16x128xf32>
    %131 = vector.shape_cast %130 : vector<16x128xf32> to vector<2x8x128xf32>
    %132 = arith.addf %126, %131 : vector<2x8x128xf32>
    %c0_69 = arith.constant 0 : index
    %c0_70 = arith.constant 0 : index
    %c0_71 = arith.constant 0 : index
    %133 = vector.load %arg9[%c0_69, %c0_70, %c0_71] : memref<2x1x128xf32, #tpu.memory_space<vmem>>, vector<1x1x128xf32>
    %134 = vector.shape_cast %133 : vector<1x1x128xf32> to vector<1x128xf32>
    %135 = vector.shape_cast %134 : vector<1x128xf32> to vector<1x1x128xf32>
    %136 = vector.broadcast %135 : vector<1x1x128xf32> to vector<2x8x128xf32>
    %137 = arith.mulf %132, %136 : vector<2x8x128xf32>
    %c1_72 = arith.constant 1 : index
    %c0_73 = arith.constant 0 : index
    %c0_74 = arith.constant 0 : index
    %138 = vector.load %arg9[%c1_72, %c0_73, %c0_74] : memref<2x1x128xf32, #tpu.memory_space<vmem>>, vector<1x1x128xf32>
    %139 = vector.shape_cast %138 : vector<1x1x128xf32> to vector<1x128xf32>
    %140 = vector.shape_cast %139 : vector<1x128xf32> to vector<1x1x128xf32>
    %141 = vector.broadcast %140 : vector<1x1x128xf32> to vector<2x8x128xf32>
    %142 = arith.addf %137, %141 : vector<2x8x128xf32>
    %cst_75 = arith.constant 0.000000e+00 : f32
    %143 = vector.broadcast %cst_75 : f32 to vector<2x8x128xf32>
    %144 = arith.maximumf %142, %143 : vector<2x8x128xf32>
    %c0_76 = arith.constant 0 : index
    %c0_77 = arith.constant 0 : index
    %c0_78 = arith.constant 0 : index
    %145 = vector.load %arg18[%c0_76, %c0_77, %c0_78] : memref<2x8x128xf32, #tpu.memory_space<vmem>>, vector<2x8x128xf32>
    tpu.vector_store %arg18[%c0_76, %c0_77, %c0_78], %144 {strides = array<i32>} : memref<2x8x128xf32, #tpu.memory_space<vmem>>, vector<2x8x128xf32>,
    %146 = arith.truncf %144 : vector<2x8x128xf32> to vector<2x8x128xbf16>
    %c0_79 = arith.constant 0 : index
    %c0_80 = arith.constant 0 : index
    %c0_81 = arith.constant 0 : index
    %147 = vector.load %arg10[%c0_79, %c0_80, %c0_81] : memref<3x128x128xbf16, #tpu.memory_space<vmem>>, vector<1x128x128xbf16>
    %148 = vector.shape_cast %147 : vector<1x128x128xbf16> to vector<128x128xbf16>
    %149 = vector.shape_cast %146 : vector<2x8x128xbf16> to vector<16x128xbf16>
    %cst_82 = arith.constant dense<0.000000e+00> : vector<16x128xf32>
    %150 = tpu.matmul %149, %148, %cst_82 {dimension_numbers = #tpu.dot_dimension_numbers<[1], [0], [0], [1], [0, 0, 1, 1], [], []>} : vector<16x128xbf16>, vector<128x128xbf16>, vector<16x128xf32> -> vector<16x128xf32>
    %151 = vector.shape_cast %150 : vector<16x128xf32> to vector<2x8x128xf32>
    %c1_83 = arith.constant 1 : index
    %c0_84 = arith.constant 0 : index
    %c0_85 = arith.constant 0 : index
    %152 = vector.load %arg10[%c1_83, %c0_84, %c0_85] : memref<3x128x128xbf16, #tpu.memory_space<vmem>>, vector<1x128x128xbf16>
    %153 = vector.shape_cast %152 : vector<1x128x128xbf16> to vector<128x128xbf16>
    %154 = vector.shape_cast %146 : vector<2x8x128xbf16> to vector<16x128xbf16>
    %cst_86 = arith.constant dense<0.000000e+00> : vector<16x128xf32>
    %155 = tpu.matmul %154, %153, %cst_86 {dimension_numbers = #tpu.dot_dimension_numbers<[1], [0], [0], [1], [0, 0, 1, 1], [], []>} : vector<16x128xbf16>, vector<128x128xbf16>, vector<16x128xf32> -> vector<16x128xf32>
    %156 = vector.shape_cast %155 : vector<16x128xf32> to vector<2x8x128xf32>
    %c2_87 = arith.constant 2 : index
    %c0_88 = arith.constant 0 : index
    %c0_89 = arith.constant 0 : index
    %157 = vector.load %arg10[%c2_87, %c0_88, %c0_89] : memref<3x128x128xbf16, #tpu.memory_space<vmem>>, vector<1x128x128xbf16>
    %158 = vector.shape_cast %157 : vector<1x128x128xbf16> to vector<128x128xbf16>
    %159 = vector.shape_cast %146 : vector<2x8x128xbf16> to vector<16x128xbf16>
    %cst_90 = arith.constant dense<0.000000e+00> : vector<16x128xf32>
    %160 = tpu.matmul %159, %158, %cst_90 {dimension_numbers = #tpu.dot_dimension_numbers<[1], [0], [0], [1], [0, 0, 1, 1], [], []>} : vector<16x128xbf16>, vector<128x128xbf16>, vector<16x128xf32> -> vector<16x128xf32>
    %161 = vector.shape_cast %160 : vector<16x128xf32> to vector<2x8x128xf32>
    %cst_91 = arith.constant 0.000000e+00 : f32
    %162 = vector.broadcast %cst_91 : f32 to vector<2x8x128xf32>
    %163 = tpu.concatenate %151, %162 in 0 : vector<2x8x128xf32>, vector<2x8x128xf32> -> vector<4x8x128xf32>
    %cst_92 = arith.constant 0.000000e+00 : f32
    %164 = vector.broadcast %cst_92 : f32 to vector<1x8x128xf32>
    %cst_93 = arith.constant 0.000000e+00 : f32
    %165 = vector.broadcast %cst_93 : f32 to vector<1x8x128xf32>
    %166 = tpu.concatenate %164, %156, %165 in 0 : vector<1x8x128xf32>, vector<2x8x128xf32>, vector<1x8x128xf32> -> vector<4x8x128xf32>
    %167 = arith.addf %163, %166 : vector<4x8x128xf32>
    %cst_94 = arith.constant 0.000000e+00 : f32
    %168 = vector.broadcast %cst_94 : f32 to vector<2x8x128xf32>
    %169 = tpu.concatenate %168, %161 in 0 : vector<2x8x128xf32>, vector<2x8x128xf32> -> vector<4x8x128xf32>
    %170 = arith.addf %167, %169 : vector<4x8x128xf32>
    %c0_95 = arith.constant 0 : index
    %c0_96 = arith.constant 0 : index
    %c0_97 = arith.constant 0 : index
    %171 = vector.load %arg11[%c0_95, %c0_96, %c0_97] : memref<2x1x128xf32, #tpu.memory_space<vmem>>, vector<1x1x128xf32>
    %172 = vector.shape_cast %171 : vector<1x1x128xf32> to vector<1x128xf32>
    %173 = vector.shape_cast %172 : vector<1x128xf32> to vector<1x1x128xf32>
    %174 = vector.broadcast %173 : vector<1x1x128xf32> to vector<4x8x128xf32>
    %175 = arith.mulf %170, %174 : vector<4x8x128xf32>
    %c1_98 = arith.constant 1 : index
    %c0_99 = arith.constant 0 : index
    %c0_100 = arith.constant 0 : index
    %176 = vector.load %arg11[%c1_98, %c0_99, %c0_100] : memref<2x1x128xf32, #tpu.memory_space<vmem>>, vector<1x1x128xf32>
    %177 = vector.shape_cast %176 : vector<1x1x128xf32> to vector<1x128xf32>
    %178 = vector.shape_cast %177 : vector<1x128xf32> to vector<1x1x128xf32>
    %179 = vector.broadcast %178 : vector<1x1x128xf32> to vector<4x8x128xf32>
    %180 = arith.addf %175, %179 : vector<4x8x128xf32>
    %cst_101 = arith.constant 0.000000e+00 : f32
    %181 = vector.broadcast %cst_101 : f32 to vector<4x8x128xf32>
    %182 = arith.maximumf %180, %181 : vector<4x8x128xf32>
    %183 = arith.truncf %182 : vector<4x8x128xf32> to vector<4x8x128xbf16>
    %c0_102 = arith.constant 0 : index
    %c0_103 = arith.constant 0 : index
    %c0_104 = arith.constant 0 : index
    %184 = vector.load %arg12[%c0_102, %c0_103, %c0_104] : memref<3x128x96xbf16, #tpu.memory_space<vmem>>, vector<1x128x96xbf16>
    %185 = vector.shape_cast %184 : vector<1x128x96xbf16> to vector<128x96xbf16>
    %186 = vector.shape_cast %183 : vector<4x8x128xbf16> to vector<32x128xbf16>
    %cst_105 = arith.constant dense<0.000000e+00> : vector<32x96xf32>
    %187 = tpu.matmul %186, %185, %cst_105 {dimension_numbers = #tpu.dot_dimension_numbers<[1], [0], [0], [1], [0, 0, 1, 1], [], []>} : vector<32x128xbf16>, vector<128x96xbf16>, vector<32x96xf32> -> vector<32x96xf32>
    %188 = vector.shape_cast %187 : vector<32x96xf32> to vector<4x8x96xf32>
    %c1_106 = arith.constant 1 : index
    %c0_107 = arith.constant 0 : index
    %c0_108 = arith.constant 0 : index
    %189 = vector.load %arg12[%c1_106, %c0_107, %c0_108] : memref<3x128x96xbf16, #tpu.memory_space<vmem>>, vector<1x128x96xbf16>
    %190 = vector.shape_cast %189 : vector<1x128x96xbf16> to vector<128x96xbf16>
    %191 = vector.shape_cast %183 : vector<4x8x128xbf16> to vector<32x128xbf16>
    %cst_109 = arith.constant dense<0.000000e+00> : vector<32x96xf32>
    %192 = tpu.matmul %191, %190, %cst_109 {dimension_numbers = #tpu.dot_dimension_numbers<[1], [0], [0], [1], [0, 0, 1, 1], [], []>} : vector<32x128xbf16>, vector<128x96xbf16>, vector<32x96xf32> -> vector<32x96xf32>
    %193 = vector.shape_cast %192 : vector<32x96xf32> to vector<4x8x96xf32>
    %c2_110 = arith.constant 2 : index
    %c0_111 = arith.constant 0 : index
    %c0_112 = arith.constant 0 : index
    %194 = vector.load %arg12[%c2_110, %c0_111, %c0_112] : memref<3x128x96xbf16, #tpu.memory_space<vmem>>, vector<1x128x96xbf16>
    %195 = vector.shape_cast %194 : vector<1x128x96xbf16> to vector<128x96xbf16>
    %196 = vector.shape_cast %183 : vector<4x8x128xbf16> to vector<32x128xbf16>
    %cst_113 = arith.constant dense<0.000000e+00> : vector<32x96xf32>
    %197 = tpu.matmul %196, %195, %cst_113 {dimension_numbers = #tpu.dot_dimension_numbers<[1], [0], [0], [1], [0, 0, 1, 1], [], []>} : vector<32x128xbf16>, vector<128x96xbf16>, vector<32x96xf32> -> vector<32x96xf32>
    %198 = vector.shape_cast %197 : vector<32x96xf32> to vector<4x8x96xf32>
    %cst_114 = arith.constant 0.000000e+00 : f32
    %199 = vector.broadcast %cst_114 : f32 to vector<2x8x96xf32>
    %200 = tpu.concatenate %188, %199 in 0 : vector<4x8x96xf32>, vector<2x8x96xf32> -> vector<6x8x96xf32>
    %cst_115 = arith.constant 0.000000e+00 : f32
    %201 = vector.broadcast %cst_115 : f32 to vector<1x8x96xf32>
    %cst_116 = arith.constant 0.000000e+00 : f32
    %202 = vector.broadcast %cst_116 : f32 to vector<1x8x96xf32>
    %203 = tpu.concatenate %201, %193, %202 in 0 : vector<1x8x96xf32>, vector<4x8x96xf32>, vector<1x8x96xf32> -> vector<6x8x96xf32>
    %204 = arith.addf %200, %203 : vector<6x8x96xf32>
    %cst_117 = arith.constant 0.000000e+00 : f32
    %205 = vector.broadcast %cst_117 : f32 to vector<2x8x96xf32>
    %206 = tpu.concatenate %205, %198 in 0 : vector<2x8x96xf32>, vector<4x8x96xf32> -> vector<6x8x96xf32>
    %207 = arith.addf %204, %206 : vector<6x8x96xf32>
    %c0_118 = arith.constant 0 : index
    %c0_119 = arith.constant 0 : index
    %c0_120 = arith.constant 0 : index
    %208 = vector.load %arg13[%c0_118, %c0_119, %c0_120] : memref<2x1x96xf32, #tpu.memory_space<vmem>>, vector<1x1x96xf32>
    %209 = vector.shape_cast %208 : vector<1x1x96xf32> to vector<1x96xf32>
    %210 = vector.shape_cast %209 : vector<1x96xf32> to vector<1x1x96xf32>
    %211 = vector.broadcast %210 : vector<1x1x96xf32> to vector<6x8x96xf32>
    %212 = arith.mulf %207, %211 : vector<6x8x96xf32>
    %c1_121 = arith.constant 1 : index
    %c0_122 = arith.constant 0 : index
    %c0_123 = arith.constant 0 : index
    %213 = vector.load %arg13[%c1_121, %c0_122, %c0_123] : memref<2x1x96xf32, #tpu.memory_space<vmem>>, vector<1x1x96xf32>
    %214 = vector.shape_cast %213 : vector<1x1x96xf32> to vector<1x96xf32>
    %215 = vector.shape_cast %214 : vector<1x96xf32> to vector<1x1x96xf32>
    %216 = vector.broadcast %215 : vector<1x1x96xf32> to vector<6x8x96xf32>
    %217 = arith.addf %212, %216 : vector<6x8x96xf32>
    %cst_124 = arith.constant 0.000000e+00 : f32
    %218 = vector.broadcast %cst_124 : f32 to vector<6x8x96xf32>
    %219 = arith.maximumf %217, %218 : vector<6x8x96xf32>
    %220 = arith.truncf %219 : vector<6x8x96xf32> to vector<6x8x96xbf16>
    %c0_125 = arith.constant 0 : index
    %c0_126 = arith.constant 0 : index
    %c0_127 = arith.constant 0 : index
    %221 = vector.load %arg14[%c0_125, %c0_126, %c0_127] : memref<3x96x52xbf16, #tpu.memory_space<vmem>>, vector<1x96x52xbf16>
    %222 = vector.shape_cast %221 : vector<1x96x52xbf16> to vector<96x52xbf16>
    %223 = vector.shape_cast %220 : vector<6x8x96xbf16> to vector<48x96xbf16>
    %cst_128 = arith.constant dense<0.000000e+00> : vector<48x52xf32>
    %224 = tpu.matmul %223, %222, %cst_128 {dimension_numbers = #tpu.dot_dimension_numbers<[1], [0], [0], [1], [0, 0, 1, 1], [], []>} : vector<48x96xbf16>, vector<96x52xbf16>, vector<48x52xf32> -> vector<48x52xf32>
    %225 = vector.shape_cast %224 : vector<48x52xf32> to vector<6x8x52xf32>
    %c1_129 = arith.constant 1 : index
    %c0_130 = arith.constant 0 : index
    %c0_131 = arith.constant 0 : index
    %226 = vector.load %arg14[%c1_129, %c0_130, %c0_131] : memref<3x96x52xbf16, #tpu.memory_space<vmem>>, vector<1x96x52xbf16>
    %227 = vector.shape_cast %226 : vector<1x96x52xbf16> to vector<96x52xbf16>
    %228 = vector.shape_cast %220 : vector<6x8x96xbf16> to vector<48x96xbf16>
    %cst_132 = arith.constant dense<0.000000e+00> : vector<48x52xf32>
    %229 = tpu.matmul %228, %227, %cst_132 {dimension_numbers = #tpu.dot_dimension_numbers<[1], [0], [0], [1], [0, 0, 1, 1], [], []>} : vector<48x96xbf16>, vector<96x52xbf16>, vector<48x52xf32> -> vector<48x52xf32>
    %230 = vector.shape_cast %229 : vector<48x52xf32> to vector<6x8x52xf32>
    %c2_133 = arith.constant 2 : index
    %c0_134 = arith.constant 0 : index
    %c0_135 = arith.constant 0 : index
    %231 = vector.load %arg14[%c2_133, %c0_134, %c0_135] : memref<3x96x52xbf16, #tpu.memory_space<vmem>>, vector<1x96x52xbf16>
    %232 = vector.shape_cast %231 : vector<1x96x52xbf16> to vector<96x52xbf16>
    %233 = vector.shape_cast %220 : vector<6x8x96xbf16> to vector<48x96xbf16>
    %cst_136 = arith.constant dense<0.000000e+00> : vector<48x52xf32>
    %234 = tpu.matmul %233, %232, %cst_136 {dimension_numbers = #tpu.dot_dimension_numbers<[1], [0], [0], [1], [0, 0, 1, 1], [], []>} : vector<48x96xbf16>, vector<96x52xbf16>, vector<48x52xf32> -> vector<48x52xf32>
    %235 = vector.shape_cast %234 : vector<48x52xf32> to vector<6x8x52xf32>
    %cst_137 = arith.constant 0.000000e+00 : f32
    %236 = vector.broadcast %cst_137 : f32 to vector<1x8x52xf32>
    %237 = tpu.concatenate %225, %236 in 0 : vector<6x8x52xf32>, vector<1x8x52xf32> -> vector<7x8x52xf32>
    %cst_138 = arith.constant 0.000000e+00 : f32
    %238 = vector.broadcast %cst_138 : f32 to vector<1x8x52xf32>
    %239 = tpu.concatenate %238, %235 in 0 : vector<1x8x52xf32>, vector<6x8x52xf32> -> vector<7x8x52xf32>
    %240 = arith.addf %237, %239 : vector<7x8x52xf32>
    %cst_139 = arith.constant 0.000000e+00 : f32
    %241 = vector.broadcast %cst_139 : f32 to vector<1x8x52xf32>
    %242 = tpu.concatenate %230, %241 in 0 : vector<6x8x52xf32>, vector<1x8x52xf32> -> vector<7x8x52xf32>
    %243 = vector.shape_cast %240 : vector<7x8x52xf32> to vector<7x1x8x52xf32>
    %244 = vector.shape_cast %242 : vector<7x8x52xf32> to vector<7x1x8x52xf32>
    %245 = tpu.concatenate %243, %244 in 1 : vector<7x1x8x52xf32>, vector<7x1x8x52xf32> -> vector<7x2x8x52xf32>
    %246 = vector.shape_cast %245 : vector<7x2x8x52xf32> to vector<14x8x52xf32>
    %247 = vector.extract_strided_slice %246 {offsets = [0, 0, 0], sizes = [13, 8, 52], strides = [1, 1, 1]} : vector<14x8x52xf32> to vector<13x8x52xf32>
    %c0_140 = arith.constant 0 : index
    %c0_141 = arith.constant 0 : index
    %c0_142 = arith.constant 0 : index
    %248 = vector.load %arg15[%c0_140, %c0_141, %c0_142] : memref<2x1x52xf32, #tpu.memory_space<vmem>>, vector<1x1x52xf32>
    %249 = vector.shape_cast %248 : vector<1x1x52xf32> to vector<1x52xf32>
    %250 = vector.shape_cast %249 : vector<1x52xf32> to vector<1x1x52xf32>
    %251 = vector.broadcast %250 : vector<1x1x52xf32> to vector<13x8x52xf32>
    %252 = arith.mulf %247, %251 : vector<13x8x52xf32>
    %c1_143 = arith.constant 1 : index
    %c0_144 = arith.constant 0 : index
    %c0_145 = arith.constant 0 : index
    %253 = vector.load %arg15[%c1_143, %c0_144, %c0_145] : memref<2x1x52xf32, #tpu.memory_space<vmem>>, vector<1x1x52xf32>
    %254 = vector.shape_cast %253 : vector<1x1x52xf32> to vector<1x52xf32>
    %255 = vector.shape_cast %254 : vector<1x52xf32> to vector<1x1x52xf32>
    %256 = vector.broadcast %255 : vector<1x1x52xf32> to vector<13x8x52xf32>
    %257 = arith.addf %252, %256 : vector<13x8x52xf32>
    %cst_146 = arith.constant 0.000000e+00 : f32
    %258 = vector.broadcast %cst_146 : f32 to vector<13x8x52xf32>
    %259 = arith.maximumf %257, %258 : vector<13x8x52xf32>
    %260 = arith.truncf %259 : vector<13x8x52xf32> to vector<13x8x52xbf16>
    %c0_147 = arith.constant 0 : index
    %c0_148 = arith.constant 0 : index
    %c0_149 = arith.constant 0 : index
    %261 = vector.load %arg16[%c0_147, %c0_148, %c0_149] : memref<3x52x28xbf16, #tpu.memory_space<vmem>>, vector<1x52x28xbf16>
    %262 = vector.shape_cast %261 : vector<1x52x28xbf16> to vector<52x28xbf16>
    %263 = vector.shape_cast %260 : vector<13x8x52xbf16> to vector<104x52xbf16>
    %cst_150 = arith.constant dense<0.000000e+00> : vector<104x28xf32>
    %264 = tpu.matmul %263, %262, %cst_150 {dimension_numbers = #tpu.dot_dimension_numbers<[1], [0], [0], [1], [0, 0, 1, 1], [], []>} : vector<104x52xbf16>, vector<52x28xbf16>, vector<104x28xf32> -> vector<104x28xf32>
    %265 = vector.shape_cast %264 : vector<104x28xf32> to vector<13x8x28xf32>
    %c1_151 = arith.constant 1 : index
    %c0_152 = arith.constant 0 : index
    %c0_153 = arith.constant 0 : index
    %266 = vector.load %arg16[%c1_151, %c0_152, %c0_153] : memref<3x52x28xbf16, #tpu.memory_space<vmem>>, vector<1x52x28xbf16>
    %267 = vector.shape_cast %266 : vector<1x52x28xbf16> to vector<52x28xbf16>
    %268 = vector.shape_cast %260 : vector<13x8x52xbf16> to vector<104x52xbf16>
    %cst_154 = arith.constant dense<0.000000e+00> : vector<104x28xf32>
    %269 = tpu.matmul %268, %267, %cst_154 {dimension_numbers = #tpu.dot_dimension_numbers<[1], [0], [0], [1], [0, 0, 1, 1], [], []>} : vector<104x52xbf16>, vector<52x28xbf16>, vector<104x28xf32> -> vector<104x28xf32>
    %270 = vector.shape_cast %269 : vector<104x28xf32> to vector<13x8x28xf32>
    %c2_155 = arith.constant 2 : index
    %c0_156 = arith.constant 0 : index
    %c0_157 = arith.constant 0 : index
    %271 = vector.load %arg16[%c2_155, %c0_156, %c0_157] : memref<3x52x28xbf16, #tpu.memory_space<vmem>>, vector<1x52x28xbf16>
    %272 = vector.shape_cast %271 : vector<1x52x28xbf16> to vector<52x28xbf16>
    %273 = vector.shape_cast %260 : vector<13x8x52xbf16> to vector<104x52xbf16>
    %cst_158 = arith.constant dense<0.000000e+00> : vector<104x28xf32>
    %274 = tpu.matmul %273, %272, %cst_158 {dimension_numbers = #tpu.dot_dimension_numbers<[1], [0], [0], [1], [0, 0, 1, 1], [], []>} : vector<104x52xbf16>, vector<52x28xbf16>, vector<104x28xf32> -> vector<104x28xf32>
    %275 = vector.shape_cast %274 : vector<104x28xf32> to vector<13x8x28xf32>
    %cst_159 = arith.constant 0.000000e+00 : f32
    %276 = vector.broadcast %cst_159 : f32 to vector<1x8x28xf32>
    %277 = tpu.concatenate %265, %276 in 0 : vector<13x8x28xf32>, vector<1x8x28xf32> -> vector<14x8x28xf32>
    %cst_160 = arith.constant 0.000000e+00 : f32
    %278 = vector.broadcast %cst_160 : f32 to vector<1x8x28xf32>
    %279 = tpu.concatenate %278, %275 in 0 : vector<1x8x28xf32>, vector<13x8x28xf32> -> vector<14x8x28xf32>
    %280 = arith.addf %277, %279 : vector<14x8x28xf32>
    %cst_161 = arith.constant 0.000000e+00 : f32
    %281 = vector.broadcast %cst_161 : f32 to vector<1x8x28xf32>
    %282 = tpu.concatenate %270, %281 in 0 : vector<13x8x28xf32>, vector<1x8x28xf32> -> vector<14x8x28xf32>
    %283 = vector.shape_cast %280 : vector<14x8x28xf32> to vector<14x1x8x28xf32>
    %284 = vector.shape_cast %282 : vector<14x8x28xf32> to vector<14x1x8x28xf32>
    %285 = tpu.concatenate %283, %284 in 1 : vector<14x1x8x28xf32>, vector<14x1x8x28xf32> -> vector<14x2x8x28xf32>
    %286 = vector.shape_cast %285 : vector<14x2x8x28xf32> to vector<28x8x28xf32>
    %c0_162 = arith.constant 0 : index
    %c0_163 = arith.constant 0 : index
    %c0_164 = arith.constant 0 : index
    %287 = vector.load %arg17[%c0_162, %c0_163, %c0_164] : memref<2x1x28xf32, #tpu.memory_space<vmem>>, vector<1x1x28xf32>
    %288 = vector.shape_cast %287 : vector<1x1x28xf32> to vector<1x28xf32>
    %289 = vector.shape_cast %288 : vector<1x28xf32> to vector<1x1x28xf32>
    %290 = vector.broadcast %289 : vector<1x1x28xf32> to vector<28x8x28xf32>
    %291 = arith.mulf %286, %290 : vector<28x8x28xf32>
    %c1_165 = arith.constant 1 : index
    %c0_166 = arith.constant 0 : index
    %c0_167 = arith.constant 0 : index
    %292 = vector.load %arg17[%c1_165, %c0_166, %c0_167] : memref<2x1x28xf32, #tpu.memory_space<vmem>>, vector<1x1x28xf32>
    %293 = vector.shape_cast %292 : vector<1x1x28xf32> to vector<1x28xf32>
    %294 = vector.shape_cast %293 : vector<1x28xf32> to vector<1x1x28xf32>
    %295 = vector.broadcast %294 : vector<1x1x28xf32> to vector<28x8x28xf32>
    %296 = arith.addf %291, %295 : vector<28x8x28xf32>
    %cst_168 = arith.constant 0.000000e+00 : f32
    %297 = vector.broadcast %cst_168 : f32 to vector<28x8x28xf32>
    %298 = arith.maximumf %296, %297 : vector<28x8x28xf32>
    %c0_169 = arith.constant 0 : index
    %c0_170 = arith.constant 0 : index
    %c0_171 = arith.constant 0 : index
    %299 = vector.load %arg19[%c0_169, %c0_170, %c0_171] : memref<28x8x28xf32, #tpu.memory_space<vmem>>, vector<28x8x28xf32>
    tpu.vector_store %arg19[%c0_169, %c0_170, %c0_171], %298 {strides = array<i32>} : memref<28x8x28xf32, #tpu.memory_space<vmem>>, vector<28x8x28xf32>,
    return
  }
  func.func @transform_0(%arg0: i32) -> (i32, i32, i32) {
    %c0_i32 = arith.constant 0 : i32
    %c0_i32_0 = arith.constant 0 : i32
    %c0_i32_1 = arith.constant 0 : i32
    return %c0_i32, %arg0, %c0_i32_0 : i32, i32, i32
  }
  func.func @transform_1(%arg0: i32) -> (i32, i32, i32) {
    %c0_i32 = arith.constant 0 : i32
    %c0_i32_0 = arith.constant 0 : i32
    %c0_i32_1 = arith.constant 0 : i32
    %c0_i32_2 = arith.constant 0 : i32
    return %c0_i32, %c0_i32_0, %c0_i32_1 : i32, i32, i32
  }
  func.func @transform_2(%arg0: i32) -> (i32, i32, i32) {
    %c0_i32 = arith.constant 0 : i32
    %c0_i32_0 = arith.constant 0 : i32
    %c0_i32_1 = arith.constant 0 : i32
    %c0_i32_2 = arith.constant 0 : i32
    return %c0_i32, %c0_i32_0, %c0_i32_1 : i32, i32, i32
  }
  func.func @transform_3(%arg0: i32) -> (i32, i32, i32) {
    %c0_i32 = arith.constant 0 : i32
    %c0_i32_0 = arith.constant 0 : i32
    %c0_i32_1 = arith.constant 0 : i32
    %c0_i32_2 = arith.constant 0 : i32
    return %c0_i32, %c0_i32_0, %c0_i32_1 : i32, i32, i32
  }
  func.func @transform_4(%arg0: i32) -> (i32, i32, i32) {
    %c0_i32 = arith.constant 0 : i32
    %c0_i32_0 = arith.constant 0 : i32
    %c0_i32_1 = arith.constant 0 : i32
    %c0_i32_2 = arith.constant 0 : i32
    return %c0_i32, %c0_i32_0, %c0_i32_1 : i32, i32, i32
  }
  func.func @transform_5(%arg0: i32) -> (i32, i32, i32) {
    %c0_i32 = arith.constant 0 : i32
    %c0_i32_0 = arith.constant 0 : i32
    %c0_i32_1 = arith.constant 0 : i32
    %c0_i32_2 = arith.constant 0 : i32
    return %c0_i32, %c0_i32_0, %c0_i32_1 : i32, i32, i32
  }
  func.func @transform_6(%arg0: i32) -> (i32, i32, i32) {
    %c0_i32 = arith.constant 0 : i32
    %c0_i32_0 = arith.constant 0 : i32
    %c0_i32_1 = arith.constant 0 : i32
    %c0_i32_2 = arith.constant 0 : i32
    return %c0_i32, %c0_i32_0, %c0_i32_1 : i32, i32, i32
  }
  func.func @transform_7(%arg0: i32) -> (i32, i32, i32) {
    %c0_i32 = arith.constant 0 : i32
    %c0_i32_0 = arith.constant 0 : i32
    %c0_i32_1 = arith.constant 0 : i32
    %c0_i32_2 = arith.constant 0 : i32
    return %c0_i32, %c0_i32_0, %c0_i32_1 : i32, i32, i32
  }
  func.func @transform_8(%arg0: i32) -> (i32, i32, i32) {
    %c0_i32 = arith.constant 0 : i32
    %c0_i32_0 = arith.constant 0 : i32
    %c0_i32_1 = arith.constant 0 : i32
    %c0_i32_2 = arith.constant 0 : i32
    return %c0_i32, %c0_i32_0, %c0_i32_1 : i32, i32, i32
  }
  func.func @transform_9(%arg0: i32) -> (i32, i32, i32) {
    %c0_i32 = arith.constant 0 : i32
    %c0_i32_0 = arith.constant 0 : i32
    %c0_i32_1 = arith.constant 0 : i32
    %c0_i32_2 = arith.constant 0 : i32
    return %c0_i32, %c0_i32_0, %c0_i32_1 : i32, i32, i32
  }
  func.func @transform_10(%arg0: i32) -> (i32, i32, i32) {
    %c0_i32 = arith.constant 0 : i32
    %c0_i32_0 = arith.constant 0 : i32
    %c0_i32_1 = arith.constant 0 : i32
    %c0_i32_2 = arith.constant 0 : i32
    return %c0_i32, %c0_i32_0, %c0_i32_1 : i32, i32, i32
  }
  func.func @transform_11(%arg0: i32) -> (i32, i32, i32) {
    %c0_i32 = arith.constant 0 : i32
    %c0_i32_0 = arith.constant 0 : i32
    %c0_i32_1 = arith.constant 0 : i32
    %c0_i32_2 = arith.constant 0 : i32
    return %c0_i32, %c0_i32_0, %c0_i32_1 : i32, i32, i32
  }
  func.func @transform_12(%arg0: i32) -> (i32, i32, i32) {
    %c0_i32 = arith.constant 0 : i32
    %c0_i32_0 = arith.constant 0 : i32
    %c0_i32_1 = arith.constant 0 : i32
    %c0_i32_2 = arith.constant 0 : i32
    return %c0_i32, %c0_i32_0, %c0_i32_1 : i32, i32, i32
  }
  func.func @transform_13(%arg0: i32) -> (i32, i32, i32) {
    %c0_i32 = arith.constant 0 : i32
    %c0_i32_0 = arith.constant 0 : i32
    %c0_i32_1 = arith.constant 0 : i32
    %c0_i32_2 = arith.constant 0 : i32
    return %c0_i32, %c0_i32_0, %c0_i32_1 : i32, i32, i32
  }
  func.func @transform_14(%arg0: i32) -> (i32, i32, i32) {
    %c0_i32 = arith.constant 0 : i32
    %c0_i32_0 = arith.constant 0 : i32
    %c0_i32_1 = arith.constant 0 : i32
    %c0_i32_2 = arith.constant 0 : i32
    return %c0_i32, %c0_i32_0, %c0_i32_1 : i32, i32, i32
  }
  func.func @transform_15(%arg0: i32) -> (i32, i32, i32) {
    %c0_i32 = arith.constant 0 : i32
    %c0_i32_0 = arith.constant 0 : i32
    %c0_i32_1 = arith.constant 0 : i32
    %c0_i32_2 = arith.constant 0 : i32
    return %c0_i32, %c0_i32_0, %c0_i32_1 : i32, i32, i32
  }
  func.func @transform_16(%arg0: i32) -> (i32, i32, i32) {
    %c0_i32 = arith.constant 0 : i32
    %c0_i32_0 = arith.constant 0 : i32
    %c0_i32_1 = arith.constant 0 : i32
    %c0_i32_2 = arith.constant 0 : i32
    return %c0_i32, %c0_i32_0, %c0_i32_1 : i32, i32, i32
  }
  func.func @transform_17(%arg0: i32) -> (i32, i32, i32) {
    %c0_i32 = arith.constant 0 : i32
    %c0_i32_0 = arith.constant 0 : i32
    %c0_i32_1 = arith.constant 0 : i32
    return %c0_i32, %arg0, %c0_i32_0 : i32, i32, i32
  }
  func.func @transform_18(%arg0: i32) -> (i32, i32, i32) {
    %c0_i32 = arith.constant 0 : i32
    %c0_i32_0 = arith.constant 0 : i32
    %c0_i32_1 = arith.constant 0 : i32
    return %c0_i32, %arg0, %c0_i32_0 : i32, i32, i32
  }
}

</mosaic_0001>

<bundles_post_ra>
// kernel: ae_forward.1
= control target key start
LH: loop header
LB: loop body
LE: loop exit
PB: predicated region body
PF: predicated region fallthrough
CT: control target
= control target key end

     0   :  { %v5034_v0 = vmov 0.0   ;;  %vm183_vm0 = vcmask 1045504   ;;  %vm5035_vm1 = vmmov 0   ;;  %vm161_vm2 = vcmask 228352   ;;  %s6360_s1 = inlined_call_operand.vmem [shape: bf16[3,28,52], index: 1, kind: input, shape index: {}]   ;;  %s6361_s0 = inlined_call_operand.vmem [shape: f32[28,8,28], index: 0, kind: input, shape index: {}]   ;;  %s6362_s3 = inlined_call_operand.vmem [shape: bf16[3,52,96], index: 3, kind: input, shape index: {}]   ;;  %s6363_s5 = inlined_call_operand.vmem [shape: bf16[3,96,128], index: 5, kind: input, shape index: {}]   ;;  %s6364_s2 = inlined_call_operand.vmem [shape: f32[2,1,52], index: 2, kind: input, shape index: {}]   ;;  %s6365_s7 = inlined_call_operand.vmem [shape: bf16[3,128,128], index: 7, kind: input, shape index: {}]   ;;  %s6366_s4 = inlined_call_operand.vmem [shape: f32[2,1,96], index: 4, kind: input, shape index: {}]   ;;  %s6367_s9 = inlined_call_operand.vmem [shape: bf16[3,128,128], index: 9, kind: input, shape index: {}]   ;;  %s6368_s6 = inlined_call_operand.vmem [shape: f32[2,1,128], index: 6, kind: input, shape index: {}]   ;;  %s6369_s8 = inlined_call_operand.vmem [shape: f32[2,1,128], index: 8, kind: input, shape index: {}]   ;;  %s6370_s17 = inlined_call_operand.vmem [shape: f32[2,8,128], index: 17, kind: output, shape index: {0}]   ;;  %s6371_s11 = inlined_call_operand.vmem [shape: bf16[3,128,96], index: 11, kind: input, shape index: {}]   ;;  %s6372_s13 = inlined_call_operand.vmem [shape: bf16[3,96,52], index: 13, kind: input, shape index: {}]   ;;  %s6373_s10 = inlined_call_operand.vmem [shape: f32[2,1,128], index: 10, kind: input, shape index: {}]   ;;  %s6374_s12 = inlined_call_operand.vmem [shape: f32[2,1,96], index: 12, kind: input, shape index: {}]   ;;  %s6375_s15 = inlined_call_operand.vmem [shape: bf16[3,52,28], index: 15, kind: input, shape index: {}]   ;;  %s6376_s14 = inlined_call_operand.vmem [shape: f32[2,1,52], index: 14, kind: input, shape index: {}]   ;;  %s6377_s16 = inlined_call_operand.vmem [shape: f32[2,1,28], index: 16, kind: input, shape index: {}]   ;;  %s6378_s18 = inlined_call_operand.vmem [shape: f32[28,8,28], index: 18, kind: output, shape index: {1}]  }
   0x1   :  { %6382 = sst [smem:[#allocation2_spill]] %s6360_s1  ;;  %4239 = vmatprep.subr.bf16.mxu0 %v5034_v0  ;;  %4243 = vmatprep.mubr.msk.bf16.mxu0 %vm5035_vm1, %v5034_v0  ;;  %vm719_vm3 = vcmask 1041408   ;;  %vm709_vm4 = vcmask 424960   ;;  %vm1105_vm5 = vcmask 785408  }
   0x2   :  { %6383 = sst [smem:[#allocation3_spill]] %s6361_s0  ;;  %s6385_s29 = sld [smem:[#allocation2_spill]]  ;;  %4803 = vmatprep.subr.bf16.mxu1 %v5034_v0  ;;  %4255 = vmatprep.mubr.msk.bf16.mxu1 %vm5035_vm1, %v5034_v0 }
   0x3   :  { %6384 = sst [smem:[#allocation4_spill]] %s6362_s3  ;;  %s6386_s20 = sld [smem:[#allocation3_spill]] }
   0x4   :  { %s6387_s28 = sld [smem:[#allocation4_spill]] }
   0x8   :  { %v4896_v1 = vld [vmem:[%s6385_s29] sm:$0xff]   ;;  %v4897_v2 = vld [vmem:[%s6385_s29 + $0x8] sm:$0x3f]   ;;  %v4898_v11 = vld [vmem:[%s6385_s29 + $0x10] sm:$0xff]  }
   0x9   :  { %4240 = vmatpush3.bf16.msra.mxu0 %v4896_v1  ;;  %v59_v3 = vld [vmem:[%s6386_s20] sm:$0xff]  ;;  %v5149_v4 = vld [vmem:[%s6386_s20 + $0x10] sm:$0xff]  ;;  %4805 = vmatpush3.bf16.msra.mxu1 %v4896_v1  ;;  %v185_v5 = vsel %vm183_vm0, %v4897_v2, 0  ;;  %v4899_v13 = vld [vmem:[%s6385_s29 + $0x18] sm:$0x3f]  }
   0xa   :  { %4241 = vmatprep.subr.bf16.mxu0 %v5034_v0  ;;  %v5156_v6 = vld [vmem:[%s6386_s20 + $0x20] sm:$0xff]  ;;  %4804 = vmatprep.subr.bf16.mxu1 %v5034_v0  ;;  %v3972_v8 = vpack.c.bf16 %v5149_v4, %v59_v3  ;;  %v5165_v9 = vld [vmem:[%s6386_s20 + $0x30] sm:$0xff]  ;;  %v346_v14 = vsel %vm183_vm0, %v4899_v13, 0  ;;  %v60_v31 = vld [vmem:[%s6386_s20 + $0x8] sm:$0xff] }
   0xb   :  { %v3986_v7 = vpack.c.bf16 %v5156_v6, %v5149_v4  ;;  %v5170_v10 = vld [vmem:[%s6386_s20 + $0x40] sm:$0xff]  ;;  %v5190_v15 = vld [vmem:[%s6386_s20 + $0x50] sm:$0xff]  ;;  %v3973_v18 = vpack.c.bf16 %v5165_v9, %v5156_v6  ;;  %v62_v32 = vld [vmem:[%s6386_s20 + $0x18] sm:$0xff] }
   0xc   :  { %v3987_v12 = vpack.c.bf16 %v5170_v10, %v5165_v9  ;;  %v5195_v16 = vld [vmem:[%s6386_s20 + $0x60] sm:$0xff]  ;;  %v5200_v17 = vld [vmem:[%s6386_s20 + $0x70] sm:$0xff]  ;;  %v3974_v30 = vpack.c.bf16 %v5190_v15, %v5170_v10  ;;  %v3979_v34 = vpack.c.bf16 %v62_v32, %v60_v31  ;;  %v4901_v36 = vld [vmem:[%s6385_s29 + $0x28] sm:$0x3f]  }
   0xd   :  { %4242 = vmatpush3.bf16.msra.mxu0 %v185_v5  ;;  %4806 = vmatpush3.bf16.msra.mxu1 %v185_v5  ;;  %v3988_v19 = vpack.c.bf16 %v5195_v16, %v5190_v15  ;;  %v3975_v20 = vpack.c.bf16 %v5200_v17, %v5195_v16  ;;  %v5211_v21 = vld [vmem:[%s6386_s20 + $0x80] sm:$0xff]  ;;  %v5216_v22 = vld [vmem:[%s6386_s20 + $0x90] sm:$0xff]  ;;  %v64_v37 = vld [vmem:[%s6386_s20 + $0x28] sm:$0xff]  ;;  %v496_v39 = vsel %vm183_vm0, %v4901_v36, 0 }
   0xe   :  { %4271 = vmatprep.subr.bf16.mxu0 %v5034_v0  ;;  %4335 = vmatprep.subr.bf16.mxu1 %v5034_v0  ;;  %v5221_v23 = vld [vmem:[%s6386_s20 + $0xa0] sm:$0xff]  ;;  %v3989_v24 = vpack.c.bf16 %v5211_v21, %v5200_v17  ;;  %v5230_v26 = vld [vmem:[%s6386_s20 + $0xb0] sm:$0xff]  ;;  %v3976_v29 = vpack.c.bf16 %v5216_v22, %v5211_v21  ;;  %v66_v38 = vld [vmem:[%s6386_s20 + $0x38] sm:$0xff] }
   0xf   :  { %v3990_v25 = vpack.c.bf16 %v5221_v23, %v5216_v22  ;;  %v5235_v27 = vld [vmem:[%s6386_s20 + $0xc0] sm:$0xff]  ;;  %v3977_v33 = vpack.c.bf16 %v5230_v26, %v5221_v23  ;;  %v3980_v41 = vpack.c.bf16 %v66_v38, %v64_v37  ;;  %v68_v42 = vld [vmem:[%s6386_s20 + $0x48] sm:$0xff]  ;;  %v70_v43 = vld [vmem:[%s6386_s20 + $0x58] sm:$0xff] }
  0x10   :  { %4244 = vmatmul.mubr.msk.bf16.vlgmr.msra.gmra.mrb[0].mxu0 %vm161_vm2, %v3972_v8  ;;  %4256 = vmatmul.mubr.msk.bf16.vlgmr.msra.gmra.mrb[0].mxu1 %vm161_vm2, %v3975_v20  ;;  %v3991_v28 = vpack.c.bf16 %v5235_v27, %v5230_v26  ;;  %v4900_v35 = vld [vmem:[%s6385_s29 + $0x20] sm:$0xff]   ;;  %v3978_v40 = vpack.c.bf16 %v5235_v27, %v5235_v27  ;;  %v3981_v44 = vpack.c.bf16 %v70_v43, %v68_v42  ;;  %v72_v45 = vld [vmem:[%s6386_s20 + $0x68] sm:$0xff]  ;;  %v74_v46 = vld [vmem:[%s6386_s20 + $0x78] sm:$0xff] }
  0x11   :  { %4272 = vmatpush3.bf16.msra.mxu0 %v4898_v11  ;;  %4247 = vmatprep.mubr.msk.bf16.mxu0 %vm5035_vm1, %v5034_v0  ;;  %v3982_v47 = vpack.c.bf16 %v74_v46, %v72_v45  ;;  %v76_v48 = vld [vmem:[%s6386_s20 + $0x88] sm:$0xff]  ;;  %v78_v49 = vld [vmem:[%s6386_s20 + $0x98] sm:$0xff]  ;;  %v85_v56 = vld [vmem:[%s6386_s20 + $0xd0] sm:$0xff] }
  0x12   :  { %4273 = vmatprep.subr.bf16.mxu0 %v5034_v0  ;;  %4259 = vmatprep.mubr.msk.bf16.mxu1 %vm5035_vm1, %v5034_v0  ;;  %v3983_v50 = vpack.c.bf16 %v78_v49, %v76_v48  ;;  %v80_v51 = vld [vmem:[%s6386_s20 + $0xa8] sm:$0xff]  ;;  %v82_v52 = vld [vmem:[%s6386_s20 + $0xb8] sm:$0xff]  ;;  %v3992_v57 = vpack.c.bf16 %v85_v56, %v85_v56  ;;  %v4902_v58 = vld [vmem:[%s6387_s28] sm:$0xff]  }
  0x13   :  { %v3984_v53 = vpack.c.bf16 %v82_v52, %v80_v51  ;;  %v84_v54 = vld [vmem:[%s6386_s20 + $0xc8] sm:$0xff]  ;;  %4336 = vmatpush3.bf16.msra.mxu1 %v4902_v58  ;;  %v4904_v60 = vld [vmem:[%s6387_s28 + $0x10] sm:$0xff]   ;;  %v4905_v61 = vld [vmem:[%s6387_s28 + $0x18] ss:$0 sps:$4 sm:$0x33]  }
  0x14   :  { %v3985_v55 = vpack.c.bf16 %v84_v54, %v84_v54  ;;  %4337 = vmatprep.subr.bf16.mxu1 %v5034_v0  ;;  %v4903_v59 = vld [vmem:[%s6387_s28 + $0x8] sm:$0xff]   ;;  %v721_v62 = vsel %vm719_vm3, %v4905_v61, 0  ;;  %v5417_v22 = vld [vmem:[%s6364_s2 + $0x1] ss:$0 sm:$0xff] }
  0x15   :  { %4274 = vmatpush3.bf16.msra.mxu0 %v346_v14  ;;  %v4906_v36 = vld [vmem:[%s6387_s28 + $0x1c] sm:$0xff]   ;;  %v4907_v45 = vld [vmem:[%s6387_s28 + $0x24] sm:$0xff]   ;;  %v4908_v49 = vld [vmem:[%s6387_s28 + $0x2c] sm:$0xff]  }
  0x16   :  { %4303 = vmatprep.subr.bf16.mxu0 %v5034_v0  ;;  %v4909_v51 = vld [vmem:[%s6387_s28 + $0x34] ss:$0 sps:$4 sm:$0x33]  }
  0x17   :  { %4338 = vmatpush3.bf16.msra.mxu1 %v4903_v59 }
  0x18   :  { %4248 = vmatmul.mubr.msk.bf16.gmra.mrb[4].mxu0 %vm161_vm2, %v3973_v18  ;;  %4260 = vmatmul.mubr.msk.bf16.gmra.mrb[4].mxu1 %vm161_vm2, %v3976_v29  ;;  %v5411_v18 = vld [vmem:[%s6364_s2] ss:$0 sm:$0xff] }
  0x19   :  { %4251 = vmatprep.mubr.msk.bf16.mxu0 %vm5035_vm1, %v5034_v0  ;;  %4263 = vmatprep.mubr.msk.bf16.mxu1 %vm5035_vm1, %v5034_v0 }
  0x1a   :  { %4339 = vmatprep.subr.bf16.mxu1 %v5034_v0 }
  0x1b   :  { %4340 = vmatpush3.bf16.msra.mxu1 %v4904_v60  ;;  %v834_v60 = vsel %vm719_vm3, %v4909_v51, 0  ;;  %v4916_v51 = vld [vmem:[%s6363_s5 + $0x10] sm:$0xff]  }
  0x1c   :  { %4341 = vmatprep.subr.bf16.mxu1 %v5034_v0 }
  0x1f   :  { %4342 = vmatpush3.bf16.msra.mxu1 %v721_v62 }
  0x20   :  { %4252 = vmatmul.mubr.msk.bf16.gmra.mrb[8].mxu0 %vm161_vm2, %v3974_v30  ;;  %4264 = vmatmul.mubr.msk.bf16.gmra.mrb[8].mxu1 %vm161_vm2, %v3977_v33 }
  0x21   :  { %4275 = vmatprep.mubr.msk.bf16.mxu0 %vm5035_vm1, %v5034_v0  ;;  %4267 = vmatprep.mubr.msk.bf16.mxu1 %vm5035_vm1, %v5034_v0 }
  0x22   :  { %4355 = vmatprep.subr.bf16.mxu1 %v5034_v0 }
  0x28   :  { %4276 = vmatmul.mubr.msk.bf16.vlgmr.msra.gmra.mrb[0].mxu0 %vm161_vm2, %v3979_v34  ;;  %4268 = vmatmul.mubr.msk.bf16.gmra.mrb[12].mxu1 %vm161_vm2, %v3978_v40 }
  0x29   :  { %4304 = vmatpush3.bf16.msra.mxu0 %v4900_v35  ;;  %4279 = vmatprep.mubr.msk.bf16.mxu0 %vm5035_vm1, %v5034_v0 }
  0x2a   :  { %4305 = vmatprep.subr.bf16.mxu0 %v5034_v0  ;;  %4343 = vmatprep.mubr.msk.bf16.mxu1 %vm5035_vm1, %v5034_v0 }
  0x2d   :  { %4306 = vmatpush3.bf16.msra.mxu0 %v496_v39 }
  0x2e   :  { %4503 = vmatprep.subr.bf16.mxu0 %v5034_v0 }
  0x30   :  { %4280 = vmatmul.mubr.msk.bf16.gmra.mrb[4].mxu0 %vm161_vm2, %v3980_v41 }
  0x31   :  { %4283 = vmatprep.mubr.msk.bf16.mxu0 %vm5035_vm1, %v5034_v0 }
  0x38   :  { %4284 = vmatmul.mubr.msk.bf16.gmra.mrb[8].mxu0 %vm161_vm2, %v3981_v44 }
  0x39   :  { %4287 = vmatprep.mubr.msk.bf16.mxu0 %vm5035_vm1, %v5034_v0 }
  0x40   :  { %4288 = vmatmul.mubr.msk.bf16.gmra.mrb[12].mxu0 %vm161_vm2, %v3982_v47 }
  0x41   :  { %4291 = vmatprep.mubr.msk.bf16.mxu0 %vm5035_vm1, %v5034_v0 }
  0x48   :  { %4292 = vmatmul.mubr.msk.bf16.gmra.mrb[16].mxu0 %vm161_vm2, %v3983_v50 }
  0x49   :  { %4295 = vmatprep.mubr.msk.bf16.mxu0 %vm5035_vm1, %v5034_v0 }
  0x50   :  { %4296 = vmatmul.mubr.msk.bf16.gmra.mrb[20].mxu0 %vm161_vm2, %v3984_v53 }
  0x51   :  { %4299 = vmatprep.mubr.msk.bf16.mxu0 %vm5035_vm1, %v5034_v0 }
  0x58   :  { %4300 = vmatmul.mubr.msk.bf16.gmra.mrb[24].mxu0 %vm161_vm2, %v3985_v55 }
  0x59   :  { %4307 = vmatprep.mubr.msk.bf16.mxu0 %vm5035_vm1, %v5034_v0 }
  0x60   :  { %4308 = vmatmul.mubr.msk.bf16.vlgmr.msra.gmra.mrb[0].mxu0 %vm161_vm2, %v3986_v7 }
  0x61   :  { %4311 = vmatprep.mubr.msk.bf16.mxu0 %vm5035_vm1, %v5034_v0 }
  0x68   :  { %4312 = vmatmul.mubr.msk.bf16.gmra.mrb[4].mxu0 %vm161_vm2, %v3987_v12 }
  0x69   :  { %4315 = vmatprep.mubr.msk.bf16.mxu0 %vm5035_vm1, %v5034_v0 }
  0x70   :  { %4316 = vmatmul.mubr.msk.bf16.gmra.mrb[8].mxu0 %vm161_vm2, %v3988_v19 }
  0x71   :  { %4319 = vmatprep.mubr.msk.bf16.mxu0 %vm5035_vm1, %v5034_v0 }
  0x78   :  { %4320 = vmatmul.mubr.msk.bf16.gmra.mrb[12].mxu0 %vm161_vm2, %v3989_v24 }
  0x79   :  { %4323 = vmatprep.mubr.msk.bf16.mxu0 %vm5035_vm1, %v5034_v0 }
  0x80   :  { %4324 = vmatmul.mubr.msk.bf16.gmra.mrb[16].mxu0 %vm161_vm2, %v3990_v25 }
  0x81   :  { %4327 = vmatprep.mubr.msk.bf16.mxu0 %vm5035_vm1, %v5034_v0 }
  0x88   :  { %4328 = vmatmul.mubr.msk.bf16.gmra.mrb[20].mxu0 %vm161_vm2, %v3991_v28 }
  0x89   :  { %4331 = vmatprep.mubr.msk.bf16.mxu0 %vm5035_vm1, %v5034_v0 }
  0x90   :  { %4332 = vmatmul.mubr.msk.bf16.gmra.mrb[24].mxu0 %vm161_vm2, %v3992_v57 }
  0x91   :  { %4519 = vmatprep.mubr.msk.bf16.mxu0 %vm5035_vm1, %v5034_v0 }
  0xe3   :  { %v5394_v63 = vpop.f32.mrb[0].mxu1 }
  0xe4   :  { %v4257_v1 = vpop.f32.mrb[1].mxu1 }
  0xe5   :  { %v5396_v2 = vpop.f32.mrb[2].mxu1 }
  0xe6   :  { %v4258_v3 = vpop.f32.mrb[3].mxu1 }
  0xeb   :  { %v5398_v4 = vpop.f32.mrb[4].mxu1 }
  0xec   :  { %v4261_v5 = vpop.f32.mrb[5].mxu1 }
  0xed   :  { %v5400_v6 = vpop.f32.mrb[6].mxu1 }
  0xee   :  { %v4262_v7 = vpop.f32.mrb[7].mxu1 }
  0xf3   :  { %v5402_v8 = vpop.f32.mrb[8].mxu1 }
  0xf4   :  { %v4265_v9 = vpop.f32.mrb[9].mxu1 }
  0xf5   :  { %v5404_v10 = vpop.f32.mrb[10].mxu1 }
  0xf6   :  { %v4266_v11 = vpop.f32.mrb[11].mxu1 }
  0xfb   :  { %v5406_v12 = vpop.f32.mrb[12].mxu1 }
  0xfc   :  { %v4269_v13 = vpop.f32.mrb[13].mxu1 }
  0xfd   :  { %v272_v14 = vpop.f32.mrb[14].mxu1 }
  0xfe   :  { %v4270_v15 = vpop.f32.mrb[15].mxu1 }
 0x133   :  { %v532_v16 = vpop.f32.mrb[0].mxu0 }
 0x134   :  { %v4309_v17 = vpop.f32.mrb[1].mxu0  ;;  %v606_v21 = vmul.f32 %v5411_v18, %v532_v16 }
 0x135   :  { %v535_v19 = vpop.f32.mrb[2].mxu0 }
 0x136   :  { %v4310_v20 = vpop.f32.mrb[3].mxu0  ;;  %v607_v23 = vmul.f32 %v5411_v18, %v535_v19  ;;  %v627_v25 = vadd.f32 %v5417_v22, %v606_v21 }
 0x138   :  { %v628_v29 = vadd.f32 %v5417_v22, %v607_v23  ;;  %v640_v33 = vmax.f32 %v627_v25, 0.0 }
 0x13a   :  { %v641_v37 = vmax.f32 %v628_v29, 0.0 }
 0x13b   :  { %v540_v24 = vpop.f32.mrb[4].mxu0 }
 0x13c   :  { %v608_v26 = vmul.f32 %v5411_v18, %v540_v24  ;;  %v4313_v27 = vpop.f32.mrb[5].mxu0 }
 0x13d   :  { %v543_v28 = vpop.f32.mrb[6].mxu0 }
 0x13e   :  { %v629_v30 = vadd.f32 %v5417_v22, %v608_v26  ;;  %v609_v31 = vmul.f32 %v5411_v18, %v543_v28  ;;  %v4314_v32 = vpop.f32.mrb[7].mxu0 }
 0x140   :  { %v642_v34 = vmax.f32 %v629_v30, 0.0  ;;  %v630_v35 = vadd.f32 %v5417_v22, %v609_v31 }
 0x142   :  { %v3993_v38 = vpack.c.bf16 %v642_v34, %v640_v33  ;;  %v643_v39 = vmax.f32 %v630_v35, 0.0 }
 0x143   :  { %v548_v40 = vpop.f32.mrb[8].mxu0 }
 0x144   :  { %v5429_v41 = vpack.c.bf16 %v643_v39, %v641_v37  ;;  %v610_v42 = vmul.f32 %v5411_v18, %v548_v40  ;;  %v4317_v43 = vpop.f32.mrb[9].mxu0  ;;  %4344 = vmatmul.mubr.msk.bf16.vlgmr.msra.gmra.mrb[16].mxu1 %vm709_vm4, %v3993_v38 }
 0x145   :  { %v551_v44 = vpop.f32.mrb[10].mxu0  ;;  %4347 = vmatprep.mubr.msk.bf16.mxu1 %vm5035_vm1, %v5034_v0  ;;  %4356 = vmatpush3.bf16.msra.mxu1 %v4906_v36 }
 0x146   :  { %v631_v46 = vadd.f32 %v5417_v22, %v610_v42  ;;  %v4318_v47 = vpop.f32.mrb[11].mxu0  ;;  %4357 = vmatprep.subr.bf16.mxu1 %v5034_v0  ;;  %v611_v53 = vmul.f32 %v5411_v18, %v551_v44 }
 0x148   :  { %v644_v48 = vmax.f32 %v631_v46, 0.0  ;;  %v632_v61 = vadd.f32 %v5417_v22, %v611_v53  ;;  %v4910_v46 = vld [vmem:[%s6387_s28 + $0x38] sm:$0xff]   ;;  %v4919_v53 = vld [vmem:[%s6363_s5 + $0x28] sm:$0xff]  }
 0x149   :  { %4358 = vmatpush3.bf16.msra.mxu1 %v4907_v45 }
 0x14a   :  { %v5443_v50 = vpack.c.bf16 %v644_v48, %v642_v34  ;;  %4359 = vmatprep.subr.bf16.mxu1 %v5034_v0  ;;  %v645_v7 = vmax.f32 %v632_v61, 0.0 }
 0x14b   :  { %v556_v52 = vpop.f32.mrb[12].mxu0 }
 0x14c   :  { %v4807_v54 = vadd.f32 %v556_v52, %v5394_v63  ;;  %v4321_v55 = vpop.f32.mrb[13].mxu0  ;;  %v4918_v52 = vld [vmem:[%s6363_s5 + $0x20] sm:$0xff]  }
 0x14d   :  { %v559_v56 = vpop.f32.mrb[14].mxu0  ;;  %4360 = vmatpush3.bf16.msra.mxu1 %v4908_v49  ;;  %v4915_v49 = vld [vmem:[%s6363_s5 + $0x8] sm:$0xff]   ;;  %v3616_v55 = vld [vmem:[%s6366_s4] ss:$0 sm:$0xff] }
 0x14e   :  { %v612_v57 = vmul.f32 %v4807_v54, %v5411_v18  ;;  %v4808_v58 = vadd.f32 %v559_v56, %v5396_v2  ;;  %v4322_v59 = vpop.f32.mrb[15].mxu0  ;;  %4361 = vmatprep.subr.bf16.mxu1 %v5034_v0  ;;  %v4920_v54 = vld [vmem:[%s6363_s5 + $0x30] sm:$0xff]  }
 0x150   :  { %v633_v62 = vadd.f32 %v5417_v22, %v612_v57  ;;  %v613_v1 = vmul.f32 %v4808_v58, %v5411_v18  ;;  %v3618_v57 = vld [vmem:[%s6366_s4 + $0x1] ss:$0 sm:$0xff] }
 0x151   :  { %4362 = vmatpush3.bf16.msra.mxu1 %v834_v60 }
 0x152   :  { %v646_v63 = vmax.f32 %v633_v62, 0.0  ;;  %v634_v3 = vadd.f32 %v5417_v22, %v613_v1  ;;  %4375 = vmatprep.subr.bf16.mxu1 %v5034_v0 }
 0x153   :  { %v564_v5 = vpop.f32.mrb[16].mxu0 }
 0x154   :  { %v3994_v2 = vpack.c.bf16 %v646_v63, %v644_v48  ;;  %v647_v9 = vmax.f32 %v634_v3, 0.0  ;;  %v4809_v11 = vadd.f32 %v564_v5, %v5398_v4  ;;  %v4325_v13 = vpop.f32.mrb[17].mxu0  ;;  %v4914_v48 = vld [vmem:[%s6363_s5] sm:$0xff]  }
 0x155   :  { %v567_v14 = vpop.f32.mrb[18].mxu0 }
 0x156   :  { %v3997_v15 = vpack.c.bf16 %v647_v9, %v645_v7  ;;  %v614_v16 = vmul.f32 %v4809_v11, %v5411_v18  ;;  %v4810_v17 = vadd.f32 %v567_v14, %v5400_v6  ;;  %v4326_v19 = vpop.f32.mrb[19].mxu0  ;;  %4348 = vmatmul.mubr.msk.bf16.gmra.mrb[20].mxu1 %vm709_vm4, %v3994_v2 }
 0x157   :  { %4351 = vmatprep.mubr.msk.bf16.mxu1 %vm5035_vm1, %v5034_v0 }
 0x158   :  { %v635_v20 = vadd.f32 %v5417_v22, %v614_v16  ;;  %v615_v4 = vmul.f32 %v4810_v17, %v5411_v18 }
 0x15a   :  { %v648_v21 = vmax.f32 %v635_v20, 0.0  ;;  %v636_v30 = vadd.f32 %v5417_v22, %v615_v4 }
 0x15b   :  { %v572_v23 = vpop.f32.mrb[20].mxu0 }
 0x15c   :  { %v4000_v24 = vpack.c.bf16 %v648_v21, %v646_v63  ;;  %v4811_v25 = vadd.f32 %v572_v23, %v5402_v8  ;;  %v4329_v26 = vpop.f32.mrb[21].mxu0  ;;  %v649_v36 = vmax.f32 %v636_v30, 0.0 }
 0x15d   :  { %v575_v27 = vpop.f32.mrb[22].mxu0  ;;  %v4921_v26 = vld [vmem:[%s6363_s5 + $0x38] sm:$0xff]  }
 0x15e   :  { %v616_v28 = vmul.f32 %v4811_v25, %v5411_v18  ;;  %v4812_v6 = vadd.f32 %v575_v27, %v5404_v10  ;;  %v4330_v29 = vpop.f32.mrb[23].mxu0 }
 0x160   :  { %v637_v31 = vadd.f32 %v5417_v22, %v616_v28  ;;  %v617_v32 = vmul.f32 %v4812_v6, %v5411_v18 }
 0x162   :  { %v650_v33 = vmax.f32 %v637_v31, 0.0  ;;  %v638_v34 = vadd.f32 %v5417_v22, %v617_v32  ;;  %v4922_v32 = vld [vmem:[%s6363_s5 + $0x40] sm:$0xff]  }
 0x163   :  { %v580_v35 = vpop.f32.mrb[24].mxu0 }
 0x164   :  { %v3995_v37 = vpack.c.bf16 %v650_v33, %v648_v21  ;;  %v651_v8 = vmax.f32 %v638_v34, 0.0  ;;  %v4813_v38 = vadd.f32 %v580_v35, %v5406_v12  ;;  %v4333_v39 = vpop.f32.mrb[25].mxu0  ;;  %v4911_v12 = vld [vmem:[%s6387_s28 + $0x40] sm:$0xff]  }
 0x165   :  { %v583_v40 = vpop.f32.mrb[26].mxu0  ;;  %v4927_v39 = vld [vmem:[%s6363_s5 + $0x68] sm:$0xff]  }
 0x166   :  { %v3998_v42 = vpack.c.bf16 %v651_v8, %v649_v36  ;;  %v618_v10 = vmul.f32 %v4813_v38, %v5411_v18  ;;  %v4334_v43 = vpop.f32.mrb[27].mxu0  ;;  %4352 = vmatmul.mubr.msk.bf16.gmra.mrb[24].mxu1 %vm709_vm4, %v3995_v37  ;;  %v4912_v18 = vld [vmem:[%s6387_s28 + $0x48] sm:$0xff]   ;;  %v4924_v37 = vld [vmem:[%s6363_s5 + $0x50] sm:$0xff]   ;;  %v4925_v8 = vld [vmem:[%s6363_s5 + $0x58] sm:$0xff]  }
 0x167   :  { %4363 = vmatprep.mubr.msk.bf16.mxu1 %vm5035_vm1, %v5034_v0  ;;  %v4923_v36 = vld [vmem:[%s6363_s5 + $0x48] sm:$0xff]   ;;  %v4926_v38 = vld [vmem:[%s6363_s5 + $0x60] sm:$0xff]   ;;  %v4928_v40 = vld [vmem:[%s6363_s5 + $0x70] sm:$0xff]  }
 0x168   :  { %v639_v44 = vadd.f32 %v5417_v22, %v618_v10  ;;  %v4913_v22 = vld [vmem:[%s6387_s28 + $0x50] ss:$0 sps:$4 sm:$0x33]   ;;  %v4930_v10 = vld [vmem:[%s6363_s5 + $0x80] sm:$0xff]   ;;  %v4931_v43 = vld [vmem:[%s6363_s5 + $0x88] sm:$0xff]  }
 0x16a   :  { %v652_v45 = vmax.f32 %v639_v44, 0.0  ;;  %v4932_v44 = vld [vmem:[%s6365_s7] sm:$0xff]  }
 0x16c   :  { %v4001_v47 = vpack.c.bf16 %v652_v45, %v650_v33  ;;  %v4933_v45 = vld [vmem:[%s6365_s7 + $0x8] sm:$0xff]  }
 0x16e   :  { %4364 = vmatmul.mubr.msk.bf16.vlgmr.msra.gmra.mrb[16].mxu1 %vm709_vm4, %v5429_v41  ;;  %v943_v41 = vsel %vm719_vm3, %v4913_v22, 0  ;;  %v4938_v22 = vld [vmem:[%s6365_s7 + $0x30] sm:$0xff]  }
 0x16f   :  { %4376 = vmatpush3.bf16.msra.mxu1 %v4910_v46  ;;  %4367 = vmatprep.mubr.msk.bf16.mxu1 %vm5035_vm1, %v5034_v0  ;;  %v4934_v46 = vld [vmem:[%s6365_s7 + $0x10] sm:$0xff]  }
 0x170   :  { %4377 = vmatprep.subr.bf16.mxu1 %v5034_v0 }
 0x173   :  { %4378 = vmatpush3.bf16.msra.mxu1 %v4911_v12  ;;  %v4936_v12 = vld [vmem:[%s6365_s7 + $0x20] sm:$0xff]  }
 0x174   :  { %4379 = vmatprep.subr.bf16.mxu1 %v5034_v0 }
 0x176   :  { %4368 = vmatmul.mubr.msk.bf16.gmra.mrb[20].mxu1 %vm709_vm4, %v3997_v15 }
 0x177   :  { %4380 = vmatpush3.bf16.msra.mxu1 %v4912_v18  ;;  %4371 = vmatprep.mubr.msk.bf16.mxu1 %vm5035_vm1, %v5034_v0  ;;  %v4937_v18 = vld [vmem:[%s6365_s7 + $0x28] sm:$0xff]  }
 0x178   :  { %4381 = vmatprep.subr.bf16.mxu1 %v5034_v0 }
 0x17b   :  { %4382 = vmatpush3.bf16.msra.mxu1 %v943_v41  ;;  %v4939_v41 = vld [vmem:[%s6365_s7 + $0x38] sm:$0xff]  }
 0x17c   :  { %4395 = vmatprep.subr.bf16.mxu1 %v4914_v48 }
 0x17e   :  { %4372 = vmatmul.mubr.msk.bf16.gmra.mrb[24].mxu1 %vm709_vm4, %v3998_v42  ;;  %v4929_v42 = vld [vmem:[%s6363_s5 + $0x78] sm:$0xff]  }
 0x17f   :  { %4383 = vmatprep.mubr.msk.bf16.mxu1 %vm5035_vm1, %v5034_v0 }
 0x186   :  { %4384 = vmatmul.mubr.msk.bf16.vlgmr.msra.gmra.mrb[16].mxu1 %vm709_vm4, %v5443_v50  ;;  %v4917_v50 = vld [vmem:[%s6363_s5 + $0x18] sm:$0xff]  }
 0x187   :  { %4387 = vmatprep.mubr.msk.bf16.mxu1 %vm5035_vm1, %v5034_v0  ;;  %4396 = vmatpush3.bf16.msra.mxu1 %v4914_v48  ;;  %v4956_v48 = vld [vmem:[%s6367_s9] sm:$0xff]  }
 0x188   :  { %4397 = vmatprep.subr.bf16.mxu1 %v4915_v49  ;;  %4504 = vmatpush3.bf16.msra.mxu0 %v4956_v48  ;;  %v4969_v48 = vld [vmem:[%s6367_s9 + $0x68] sm:$0xff]  }
 0x189   :  { %4505 = vmatprep.subr.bf16.mxu0 %v5034_v0 }
 0x18b   :  { %4398 = vmatpush3.bf16.msra.mxu1 %v4915_v49  ;;  %v4957_v49 = vld [vmem:[%s6367_s9 + $0x8] sm:$0xff]  }
 0x18c   :  { %4399 = vmatprep.subr.bf16.mxu1 %v4916_v51  ;;  %4506 = vmatpush3.bf16.msra.mxu0 %v4957_v49  ;;  %v4970_v49 = vld [vmem:[%s6367_s9 + $0x70] sm:$0xff]  }
 0x18d   :  { %4507 = vmatprep.subr.bf16.mxu0 %v5034_v0 }
 0x18e   :  { %4388 = vmatmul.mubr.msk.bf16.gmra.mrb[20].mxu1 %vm709_vm4, %v4000_v24 }
 0x18f   :  { %4391 = vmatprep.mubr.msk.bf16.mxu1 %vm5035_vm1, %v5034_v0  ;;  %4400 = vmatpush3.bf16.msra.mxu1 %v4916_v51  ;;  %v4958_v51 = vld [vmem:[%s6367_s9 + $0x10] sm:$0xff]  }
 0x190   :  { %4401 = vmatprep.subr.bf16.mxu1 %v4917_v50  ;;  %4508 = vmatpush3.bf16.msra.mxu0 %v4958_v51  ;;  %v4971_v51 = vld [vmem:[%s6367_s9 + $0x78] sm:$0xff]  }
 0x191   :  { %4509 = vmatprep.subr.bf16.mxu0 %v5034_v0 }
 0x193   :  { %4402 = vmatpush3.bf16.msra.mxu1 %v4917_v50  ;;  %v4959_v50 = vld [vmem:[%s6367_s9 + $0x18] sm:$0xff]  }
 0x194   :  { %4403 = vmatprep.subr.bf16.mxu1 %v4918_v52  ;;  %4510 = vmatpush3.bf16.msra.mxu0 %v4959_v50  ;;  %v4972_v50 = vld [vmem:[%s6367_s9 + $0x80] sm:$0xff]  }
 0x195   :  { %4511 = vmatprep.subr.bf16.mxu0 %v5034_v0 }
 0x196   :  { %4392 = vmatmul.mubr.msk.bf16.gmra.mrb[24].mxu1 %vm709_vm4, %v4001_v47  ;;  %v4935_v47 = vld [vmem:[%s6365_s7 + $0x18] sm:$0xff]  }
 0x197   :  { %4404 = vmatpush3.bf16.msra.mxu1 %v4918_v52  ;;  %v4960_v52 = vld [vmem:[%s6367_s9 + $0x20] sm:$0xff]  }
 0x198   :  { %4405 = vmatprep.subr.bf16.mxu1 %v4919_v53  ;;  %4512 = vmatpush3.bf16.msra.mxu0 %v4960_v52  ;;  %v4973_v52 = vld [vmem:[%s6367_s9 + $0x88] sm:$0xff]  }
 0x199   :  { %4513 = vmatprep.subr.bf16.mxu0 %v5034_v0 }
 0x19b   :  { %4406 = vmatpush3.bf16.msra.mxu1 %v4919_v53  ;;  %v4961_v53 = vld [vmem:[%s6367_s9 + $0x28] sm:$0xff]  }
 0x19c   :  { %4411 = vmatprep.subr.bf16.mxu1 %v4920_v54  ;;  %4514 = vmatpush3.bf16.msra.mxu0 %v4961_v53  ;;  %v4974_v53 = vld [vmem:[%s6367_s9 + $0x90] sm:$0xff]  }
 0x19d   :  { %4515 = vmatprep.subr.bf16.mxu0 %v5034_v0 }
 0x259   :  { %v979_v56 = vpop.f32.mrb[16].mxu1 }
 0x25a   :  { %v1015_v58 = vmul.f32 %v3616_v55, %v979_v56  ;;  %v4385_v59 = vpop.f32.mrb[17].mxu1 }
 0x25b   :  { %v982_v60 = vpop.f32.mrb[18].mxu1 }
 0x25c   :  { %v1029_v61 = vadd.f32 %v3618_v57, %v1015_v58  ;;  %v1016_v62 = vmul.f32 %v3616_v55, %v982_v60  ;;  %v4386_v1 = vpop.f32.mrb[19].mxu1 }
 0x25e   :  { %v1030_v63 = vadd.f32 %v3618_v57, %v1016_v62  ;;  %v1035_v3 = vmax.f32 %v1029_v61, 0.0 }
 0x260   :  { %v1036_v5 = vmax.f32 %v1030_v63, 0.0 }
 0x261   :  { %v987_v7 = vpop.f32.mrb[20].mxu1 }
 0x262   :  { %v4002_v2 = vpack.c.bf16 %v1036_v5, %v1035_v3  ;;  %v1017_v9 = vmul.f32 %v3616_v55, %v987_v7  ;;  %v4389_v11 = vpop.f32.mrb[21].mxu1 }
 0x263   :  { %v990_v13 = vpop.f32.mrb[22].mxu1 }
 0x264   :  { %v1031_v14 = vadd.f32 %v3618_v57, %v1017_v9  ;;  %v1018_v15 = vmul.f32 %v3616_v55, %v990_v13  ;;  %v4390_v16 = vpop.f32.mrb[23].mxu1  ;;  %4407 = vmatprep.mubr.msk.bf16.mxu1 %vm1105_vm5, %v4002_v2 }
 0x265   :  { %v4940_v16 = vld [vmem:[%s6365_s7 + $0x40] sm:$0xff]  }
 0x266   :  { %v1037_v17 = vmax.f32 %v1031_v14, 0.0  ;;  %v1032_v19 = vadd.f32 %v3618_v57, %v1018_v15 }
 0x268   :  { %v4004_v20 = vpack.c.bf16 %v1037_v17, %v1036_v5  ;;  %v1038_v21 = vmax.f32 %v1032_v19, 0.0 }
 0x269   :  { %v995_v23 = vpop.f32.mrb[24].mxu1 }
 0x26a   :  { %v4003_v24 = vpack.c.bf16 %v1038_v21, %v1037_v17  ;;  %v1019_v4 = vmul.f32 %v3616_v55, %v995_v23  ;;  %v4393_v25 = vpop.f32.mrb[25].mxu1  ;;  %v4943_v23 = vld [vmem:[%s6365_s7 + $0x58] sm:$0xff]  }
 0x26b   :  { %v998_v27 = vpop.f32.mrb[26].mxu1  ;;  %v4946_v25 = vld [vmem:[%s6365_s7 + $0x70] sm:$0xff]  }
 0x26c   :  { %v1033_v28 = vadd.f32 %v3618_v57, %v1019_v4  ;;  %v1020_v6 = vmul.f32 %v3616_v55, %v998_v27  ;;  %v4394_v29 = vpop.f32.mrb[27].mxu1  ;;  %4408 = vmatmul.mubr.msk.bf16.vlgmr.msra.gmra.mrb[28].mxu1 %vm1105_vm5, %v4003_v24  ;;  %v3672_v55 = vld [vmem:[%s6368_s6] ss:$0 sm:$0xff]  ;;  %v4945_v4 = vld [vmem:[%s6365_s7 + $0x68] sm:$0xff]  }
 0x26d   :  { %4412 = vmatpush3.bf16.msra.mxu1 %v4920_v54  ;;  %4423 = vmatprep.mubr.msk.bf16.mxu1 %vm1105_vm5, %v4004_v20  ;;  %v4962_v54 = vld [vmem:[%s6367_s9 + $0x30] sm:$0xff]   ;;  %v4941_v20 = vld [vmem:[%s6365_s7 + $0x48] sm:$0xff]   ;;  %v4948_v27 = vld [vmem:[%s6365_s7 + $0x80] sm:$0xff]  }
 0x26e   :  { %v1039_v30 = vmax.f32 %v1033_v28, 0.0  ;;  %v1034_v31 = vadd.f32 %v3618_v57, %v1020_v6  ;;  %4413 = vmatprep.subr.bf16.mxu1 %v4921_v26  ;;  %4516 = vmatpush3.bf16.msra.mxu0 %v4962_v54  ;;  %v3674_v57 = vld [vmem:[%s6368_s6 + $0x1] ss:$0 sm:$0xff]  ;;  %v4949_v28 = vld [vmem:[%s6365_s7 + $0x88] sm:$0xff]   ;;  %v4950_v6 = vld [vmem:[%s6365_s7 + $0x90] sm:$0xff]  }
 0x26f   :  { %4517 = vmatprep.subr.bf16.mxu0 %v5034_v0  ;;  %v4951_v29 = vld [vmem:[%s6365_s7 + $0x98] sm:$0xff]  }
 0x270   :  { %v4005_v33 = vpack.c.bf16 %v1039_v30, %v1038_v21  ;;  %v1040_v34 = vmax.f32 %v1034_v31, 0.0  ;;  %v4942_v21 = vld [vmem:[%s6365_s7 + $0x50] sm:$0xff]   ;;  %v4953_v31 = vld [vmem:[%s6365_s7 + $0xa8] sm:$0xff]   ;;  %v4975_v54 = vld [vmem:[%s6367_s9 + $0x98] sm:$0xff]  }
 0x271   :  { %4414 = vmatpush3.bf16.msra.mxu1 %v4921_v26  ;;  %v4947_v26 = vld [vmem:[%s6365_s7 + $0x78] sm:$0xff]  }
 0x272   :  { %v4006_v35 = vpack.c.bf16 %v1040_v34, %v1039_v30  ;;  %4415 = vmatprep.subr.bf16.mxu1 %v4922_v32  ;;  %v4952_v30 = vld [vmem:[%s6365_s7 + $0xa0] sm:$0xff]   ;;  %v4963_v34 = vld [vmem:[%s6367_s9 + $0x38] sm:$0xff]  }
 0x273   :  { %4518 = vmatpush3.bf16.msra.mxu0 %v4963_v34 }
 0x274   :  { %4523 = vmatprep.subr.bf16.mxu0 %v5034_v0 }
 0x275   :  { %4416 = vmatpush3.bf16.msra.mxu1 %v4922_v32  ;;  %v4954_v32 = vld [vmem:[%s6365_s7 + $0xb0] sm:$0xff]  }
 0x276   :  { %4417 = vmatprep.subr.bf16.mxu1 %v4923_v36 }
 0x279   :  { %4418 = vmatpush3.bf16.msra.mxu1 %v4923_v36 }
 0x27a   :  { %4419 = vmatprep.subr.bf16.mxu1 %v4924_v37 }
 0x27d   :  { %4420 = vmatpush3.bf16.msra.mxu1 %v4924_v37  ;;  %v3736_v37 = vld [vmem:[%s6369_s8 + $0x1] ss:$0 sm:$0xff] }
 0x27e   :  { %4421 = vmatprep.subr.bf16.mxu1 %v4925_v8 }
 0x281   :  { %4422 = vmatpush3.bf16.msra.mxu1 %v4925_v8 }
 0x282   :  { %4427 = vmatprep.subr.bf16.mxu1 %v4926_v38 }
 0x284   :  { %4424 = vmatmul.mubr.msk.bf16.vlgmr.msra.gmra.mrb[28].mxu1 %vm1105_vm5, %v4005_v33  ;;  %v4955_v33 = vld [vmem:[%s6365_s7 + $0xb8] sm:$0xff]  }
 0x285   :  { %4428 = vmatpush3.bf16.msra.mxu1 %v4926_v38  ;;  %4439 = vmatprep.mubr.msk.bf16.mxu1 %vm1105_vm5, %v4003_v24  ;;  %v4944_v24 = vld [vmem:[%s6365_s7 + $0x60] sm:$0xff]  }
 0x286   :  { %4429 = vmatprep.subr.bf16.mxu1 %v4927_v39 }
 0x289   :  { %4430 = vmatpush3.bf16.msra.mxu1 %v4927_v39 }
 0x28a   :  { %4431 = vmatprep.subr.bf16.mxu1 %v4928_v40 }
 0x28d   :  { %4432 = vmatpush3.bf16.msra.mxu1 %v4928_v40 }
 0x28e   :  { %4433 = vmatprep.subr.bf16.mxu1 %v4929_v42 }
 0x291   :  { %4434 = vmatpush3.bf16.msra.mxu1 %v4929_v42 }
 0x292   :  { %4435 = vmatprep.subr.bf16.mxu1 %v4930_v10 }
 0x295   :  { %4436 = vmatpush3.bf16.msra.mxu1 %v4930_v10 }
 0x296   :  { %4437 = vmatprep.subr.bf16.mxu1 %v4931_v43 }
 0x299   :  { %4438 = vmatpush3.bf16.msra.mxu1 %v4931_v43 }
 0x29a   :  { %4443 = vmatprep.subr.bf16.mxu1 %v5034_v0 }
 0x29c   :  { %4440 = vmatmul.mubr.msk.bf16.vlgmr.msra.gmra.mrb[28].mxu1 %vm1105_vm5, %v4006_v35  ;;  %v3734_v35 = vld [vmem:[%s6369_s8] ss:$0 sm:$0xff] }
 0x29d   :  { %4444 = vmatpush3.bf16.msra.mxu1 %v4932_v44  ;;  %4459 = vmatprep.mubr.msk.bf16.mxu1 %vm5035_vm1, %v5034_v0 }
 0x29e   :  { %4445 = vmatprep.subr.bf16.mxu1 %v5034_v0 }
 0x2a1   :  { %4446 = vmatpush3.bf16.msra.mxu1 %v4933_v45 }
 0x2a2   :  { %4447 = vmatprep.subr.bf16.mxu1 %v5034_v0 }
 0x2a5   :  { %4448 = vmatpush3.bf16.msra.mxu1 %v4934_v46  ;;  %v4964_v46 = vld [vmem:[%s6367_s9 + $0x40] sm:$0xff]  }
 0x2a6   :  { %4449 = vmatprep.subr.bf16.mxu1 %v5034_v0 }
 0x2a9   :  { %4450 = vmatpush3.bf16.msra.mxu1 %v4935_v47 }
 0x2aa   :  { %4451 = vmatprep.subr.bf16.mxu1 %v5034_v0 }
 0x2ad   :  { %4452 = vmatpush3.bf16.msra.mxu1 %v4936_v12  ;;  %v4965_v12 = vld [vmem:[%s6367_s9 + $0x48] sm:$0xff]  }
 0x2ae   :  { %4453 = vmatprep.subr.bf16.mxu1 %v5034_v0 }
 0x2b1   :  { %4454 = vmatpush3.bf16.msra.mxu1 %v4937_v18  ;;  %v4966_v18 = vld [vmem:[%s6367_s9 + $0x50] sm:$0xff]  }
 0x2b2   :  { %4455 = vmatprep.subr.bf16.mxu1 %v5034_v0 }
 0x2b5   :  { %4456 = vmatpush3.bf16.msra.mxu1 %v4938_v22  ;;  %v4967_v22 = vld [vmem:[%s6367_s9 + $0x58] sm:$0xff]  }
 0x2b6   :  { %4457 = vmatprep.subr.bf16.mxu1 %v5034_v0 }
 0x2b9   :  { %4458 = vmatpush3.bf16.msra.mxu1 %v4939_v41  ;;  %v4968_v41 = vld [vmem:[%s6367_s9 + $0x60] sm:$0xff]  }
 0x2ba   :  { %4463 = vmatprep.subr.bf16.mxu1 %v5034_v0 }
 0x36f   :  { %v4441_v56 = vpop.f32.mrb[28].mxu1 }
 0x370   :  { %v1390_v58 = vmul.f32 %v4441_v56, %v3672_v55  ;;  %v1362_v59 = vpop.f32.mrb[29].mxu1  ;;  %v4977_v56 = vld [vmem:[%s6367_s9 + $0xa8] sm:$0xff]  }
 0x371   :  { %v1388_v60 = vmul.f32 %v3672_v55, %v1362_v59  ;;  %v4442_v61 = vpop.f32.mrb[30].mxu1  ;;  %v4980_v59 = vld [vmem:[%s6371_s11] sm:$0xff]  }
 0x372   :  { %v1402_v62 = vadd.f32 %v3674_v57, %v1390_v58  ;;  %v1391_v1 = vmul.f32 %v4442_v61, %v3672_v55  ;;  %v1365_v63 = vpop.f32.mrb[31].mxu1  ;;  %v4979_v58 = vld [vmem:[%s6367_s9 + $0xb8] sm:$0xff]   ;;  %v4982_v61 = vld [vmem:[%s6371_s11 + $0x8] sm:$0xff]  }
 0x373   :  { %v1400_v3 = vadd.f32 %v3674_v57, %v1388_v60  ;;  %v1389_v5 = vmul.f32 %v3672_v55, %v1365_v63  ;;  %v4976_v55 = vld [vmem:[%s6367_s9 + $0xa0] sm:$0xff]   ;;  %v4985_v63 = vld [vmem:[%s6371_s11 + $0x50] sm:$0xff]  }
 0x374   :  { %v1403_v7 = vadd.f32 %v3674_v57, %v1391_v1  ;;  %v1406_v9 = vmax.f32 %v1402_v62, 0.0  ;;  %v4981_v60 = vld [vmem:[%s6371_s11 + $0x40] sm:$0xff]   ;;  %v4983_v62 = vld [vmem:[%s6371_s11 + $0x48] sm:$0xff]   ;;  %v4984_v1 = vld [vmem:[%s6371_s11 + $0x10] sm:$0xff]  }
 0x375   :  { %v1401_v2 = vadd.f32 %v3674_v57, %v1389_v5  ;;  %v1404_v13 = vmax.f32 %v1400_v3, 0.0  ;;  %v4978_v57 = vld [vmem:[%s6367_s9 + $0xb0] sm:$0xff]   ;;  %v4986_v3 = vld [vmem:[%s6371_s11 + $0x18] sm:$0xff]  }
 0x376   :  { %v1407_v11 = vmax.f32 %v1403_v7, 0.0  ;;  %v4987_v5 = vld [vmem:[%s6371_s11 + $0x58] sm:$0xff]   ;;  %v4988_v7 = vld [vmem:[%s6371_s11 + $0x20] sm:$0xff]  }
 0x377   :  { %v1405_v14 = vmax.f32 %v1401_v2, 0.0  ;;  %v4989_v2 = vld [vmem:[%s6371_s11 + $0x60] sm:$0xff]  }
 0x378   :  { %v4009_v15 = vpack.c.bf16 %v1407_v11, %v1406_v9  ;;  %v4991_v11 = vld [vmem:[%s6371_s11 + $0x68] sm:$0xff]  }
 0x379   :  { %v4007_v17 = vpack.c.bf16 %v1405_v14, %v1404_v13  ;;  %v4008_v19 = vpack.c.bf16 %v1406_v9, %v1405_v14  ;;  %v4990_v9 = vld [vmem:[%s6371_s11 + $0x28] sm:$0xff]   ;;  %v4992_v13 = vld [vmem:[%s6371_s11 + $0x30] sm:$0xff]  }
 0x37a   :  { %v4993_v14 = vld [vmem:[%s6371_s11 + $0x70] sm:$0xff]  }
 0x37b   :  { %4460 = vmatmul.mubr.bf16.vlgmr.msra.gmra.mrb[32].mxu1 %v4007_v17  ;;  %v4996_v17 = vld [vmem:[%s6371_s11 + $0x80] sm:$0xff]  }
 0x37c   :  { %4464 = vmatpush3.bf16.msra.mxu1 %v4940_v16  ;;  %4479 = vmatprep.mubr.msk.bf16.mxu1 %vm5035_vm1, %v5034_v0  ;;  %v4995_v16 = vld [vmem:[%s6371_s11 + $0x78] sm:$0xff]  }
 0x37d   :  { %4465 = vmatprep.subr.bf16.mxu1 %v5034_v0 }
 0x380   :  { %4466 = vmatpush3.bf16.msra.mxu1 %v4941_v20 }
 0x381   :  { %4467 = vmatprep.subr.bf16.mxu1 %v5034_v0 }
 0x384   :  { %4468 = vmatpush3.bf16.msra.mxu1 %v4942_v21 }
 0x385   :  { %4469 = vmatprep.subr.bf16.mxu1 %v5034_v0 }
 0x388   :  { %4470 = vmatpush3.bf16.msra.mxu1 %v4943_v23 }
 0x389   :  { %4471 = vmatprep.subr.bf16.mxu1 %v5034_v0 }
 0x38c   :  { %4472 = vmatpush3.bf16.msra.mxu1 %v4944_v24  ;;  %v3794_v24 = vld [vmem:[%s6373_s10] ss:$0 sm:$0xff] }
 0x38d   :  { %4473 = vmatprep.subr.bf16.mxu1 %v5034_v0 }
 0x390   :  { %4474 = vmatpush3.bf16.msra.mxu1 %v4945_v4 }
 0x391   :  { %4475 = vmatprep.subr.bf16.mxu1 %v5034_v0 }
 0x394   :  { %4476 = vmatpush3.bf16.msra.mxu1 %v4946_v25  ;;  %v3796_v25 = vld [vmem:[%s6373_s10 + $0x1] ss:$0 sm:$0xff] }
 0x395   :  { %4477 = vmatprep.subr.bf16.mxu1 %v5034_v0 }
 0x398   :  { %4478 = vmatpush3.bf16.msra.mxu1 %v4947_v26 }
 0x399   :  { %4483 = vmatprep.subr.bf16.mxu1 %v5034_v0 }
 0x39b   :  { %4480 = vmatmul.mubr.bf16.vlgmr.msra.gmra.mrb[32].mxu1 %v4008_v19 }
 0x39c   :  { %4484 = vmatpush3.bf16.msra.mxu1 %v4948_v27  ;;  %4499 = vmatprep.mubr.msk.bf16.mxu1 %vm5035_vm1, %v5034_v0 }
 0x39d   :  { %4485 = vmatprep.subr.bf16.mxu1 %v5034_v0 }
 0x3a0   :  { %4486 = vmatpush3.bf16.msra.mxu1 %v4949_v28 }
 0x3a1   :  { %4487 = vmatprep.subr.bf16.mxu1 %v5034_v0 }
 0x3a4   :  { %4488 = vmatpush3.bf16.msra.mxu1 %v4950_v6 }
 0x3a5   :  { %4489 = vmatprep.subr.bf16.mxu1 %v5034_v0 }
 0x3a8   :  { %4490 = vmatpush3.bf16.msra.mxu1 %v4951_v29 }
 0x3a9   :  { %4491 = vmatprep.subr.bf16.mxu1 %v5034_v0 }
 0x3ac   :  { %4492 = vmatpush3.bf16.msra.mxu1 %v4952_v30 }
 0x3ad   :  { %4493 = vmatprep.subr.bf16.mxu1 %v5034_v0 }
 0x3b0   :  { %4494 = vmatpush3.bf16.msra.mxu1 %v4953_v31 }
 0x3b1   :  { %4495 = vmatprep.subr.bf16.mxu1 %v5034_v0 }
 0x3b4   :  { %4496 = vmatpush3.bf16.msra.mxu1 %v4954_v32 }
 0x3b5   :  { %4497 = vmatprep.subr.bf16.mxu1 %v5034_v0 }
 0x3b8   :  { %4498 = vmatpush3.bf16.msra.mxu1 %v4955_v33 }
 0x3b9   :  { %4563 = vmatprep.subr.bf16.mxu1 %v4980_v59 }
 0x3bb   :  { %4500 = vmatmul.mubr.bf16.vlgmr.msra.gmra.mrb[32].mxu1 %v4009_v15  ;;  %v4994_v15 = vld [vmem:[%s6371_s11 + $0x38] sm:$0xff]  }
 0x3bc   :  { %4564 = vmatpush3.bf16.msra.mxu1 %v4980_v59  ;;  %v5013_v59 = vld [vmem:[%s6372_s13 + $0x80] sm:$0xff]  }
 0x3bd   :  { %4565 = vmatprep.subr.bf16.mxu1 %v4982_v61 }
 0x3c0   :  { %4566 = vmatpush3.bf16.msra.mxu1 %v4982_v61  ;;  %v5015_v61 = vld [vmem:[%s6372_s13 + $0x88] sm:$0xff]  }
 0x3c1   :  { %4567 = vmatprep.subr.bf16.mxu1 %v4984_v1 }
 0x3c4   :  { %4568 = vmatpush3.bf16.msra.mxu1 %v4984_v1 }
 0x3c5   :  { %4569 = vmatprep.subr.bf16.mxu1 %v4986_v3 }
 0x3c8   :  { %4570 = vmatpush3.bf16.msra.mxu1 %v4986_v3 }
 0x3c9   :  { %4571 = vmatprep.subr.bf16.mxu1 %v4988_v7 }
 0x3cc   :  { %4572 = vmatpush3.bf16.msra.mxu1 %v4988_v7 }
 0x3cd   :  { %4573 = vmatprep.subr.bf16.mxu1 %v4990_v9 }
 0x3d0   :  { %4574 = vmatpush3.bf16.msra.mxu1 %v4990_v9 }
 0x3d1   :  { %4575 = vmatprep.subr.bf16.mxu1 %v4992_v13 }
 0x3d4   :  { %4576 = vmatpush3.bf16.msra.mxu1 %v4992_v13 }
 0x3d5   :  { %4577 = vmatprep.subr.bf16.mxu1 %v4994_v15 }
 0x3d8   :  { %4578 = vmatpush3.bf16.msra.mxu1 %v4994_v15 }
 0x3d9   :  { %4603 = vmatprep.subr.bf16.mxu1 %v4996_v17 }
 0x48e   :  { %v1738_v36 = vpop.f32.mrb[32].mxu1 }
 0x48f   :  { %v1754_v8 = vmul.f32 %v3734_v35, %v1738_v36  ;;  %v4501_v38 = vpop.f32.mrb[33].mxu1 }
 0x490   :  { %v1741_v39 = vpop.f32.mrb[34].mxu1 }
 0x491   :  { %v1764_v40 = vadd.f32 %v3736_v37, %v1754_v8  ;;  %v1755_v42 = vmul.f32 %v3734_v35, %v1741_v39  ;;  %v4502_v10 = vpop.f32.mrb[35].mxu1 }
 0x493   :  { %v1766_v43 = vmax.f32 %v1764_v40, 0.0  ;;  %v1765_v44 = vadd.f32 %v3736_v37, %v1755_v42 }
 0x495   :  { %1768 = vst [vmem:[%s6370_s17] sm:$0xff] %v1766_v43  ;;  %v1767_v45 = vmax.f32 %v1765_v44, 0.0 }
 0x497   :  { %1769 = vst [vmem:[%s6370_s17 + $0x8] sm:$0xff] %v1767_v45  ;;  %v4010_v47 = vpack.c.bf16 %v1767_v45, %v1766_v43 }
 0x499   :  { %4520 = vmatmul.mubr.bf16.vlgmr.msra.gmra.mrb[28].mxu0 %v4010_v47 }
 0x49a   :  { %4524 = vmatpush3.bf16.msra.mxu0 %v4964_v46  ;;  %4539 = vmatprep.mubr.msk.bf16.mxu0 %vm5035_vm1, %v5034_v0 }
 0x49b   :  { %4525 = vmatprep.subr.bf16.mxu0 %v5034_v0 }
 0x49e   :  { %4526 = vmatpush3.bf16.msra.mxu0 %v4965_v12  ;;  %v5004_v12 = vld [vmem:[%s6372_s13] sm:$0xff]  }
 0x49f   :  { %4527 = vmatprep.subr.bf16.mxu0 %v5034_v0 }
 0x4a2   :  { %4528 = vmatpush3.bf16.msra.mxu0 %v4966_v18  ;;  %v4998_v18 = vld [vmem:[%s6371_s11 + $0x90] sm:$0xff]  }
 0x4a3   :  { %4529 = vmatprep.subr.bf16.mxu0 %v5034_v0 }
 0x4a6   :  { %4530 = vmatpush3.bf16.msra.mxu0 %v4967_v22  ;;  %v5006_v22 = vld [vmem:[%s6372_s13 + $0x8] sm:$0xff]  }
 0x4a7   :  { %4531 = vmatprep.subr.bf16.mxu0 %v5034_v0 }
 0x4aa   :  { %4532 = vmatpush3.bf16.msra.mxu0 %v4968_v41  ;;  %v4999_v41 = vld [vmem:[%s6371_s11 + $0x98] sm:$0xff]  }
 0x4ab   :  { %4533 = vmatprep.subr.bf16.mxu0 %v5034_v0 }
 0x4ae   :  { %4534 = vmatpush3.bf16.msra.mxu0 %v4969_v48  ;;  %v5008_v48 = vld [vmem:[%s6372_s13 + $0x10] sm:$0xff]  }
 0x4af   :  { %4535 = vmatprep.subr.bf16.mxu0 %v5034_v0 }
 0x4b2   :  { %4536 = vmatpush3.bf16.msra.mxu0 %v4970_v49  ;;  %v5000_v49 = vld [vmem:[%s6371_s11 + $0xa0] sm:$0xff]  }
 0x4b3   :  { %4537 = vmatprep.subr.bf16.mxu0 %v5034_v0 }
 0x4b6   :  { %4538 = vmatpush3.bf16.msra.mxu0 %v4971_v51  ;;  %v5001_v51 = vld [vmem:[%s6371_s11 + $0xa8] sm:$0xff]  }
 0x4b7   :  { %4543 = vmatprep.subr.bf16.mxu0 %v5034_v0 }
 0x4b9   :  { %4540 = vmatmul.mubr.bf16.vlgmr.msra.gmra.mrb[32].mxu0 %v4010_v47 }
 0x4ba   :  { %4544 = vmatpush3.bf16.msra.mxu0 %v4972_v50  ;;  %4559 = vmatprep.mubr.msk.bf16.mxu0 %vm5035_vm1, %v5034_v0  ;;  %v5002_v50 = vld [vmem:[%s6371_s11 + $0xb0] sm:$0xff]  }
 0x4bb   :  { %4545 = vmatprep.subr.bf16.mxu0 %v5034_v0 }
 0x4be   :  { %4546 = vmatpush3.bf16.msra.mxu0 %v4973_v52  ;;  %v5003_v52 = vld [vmem:[%s6371_s11 + $0xb8] sm:$0xff]  }
 0x4bf   :  { %4547 = vmatprep.subr.bf16.mxu0 %v5034_v0 }
 0x4c2   :  { %4548 = vmatpush3.bf16.msra.mxu0 %v4974_v53  ;;  %v5005_v53 = vld [vmem:[%s6372_s13 + $0x60] sm:$0xff]  }
 0x4c3   :  { %4549 = vmatprep.subr.bf16.mxu0 %v5034_v0 }
 0x4c6   :  { %4550 = vmatpush3.bf16.msra.mxu0 %v4975_v54  ;;  %v5007_v54 = vld [vmem:[%s6372_s13 + $0x68] sm:$0xff]  }
 0x4c7   :  { %4551 = vmatprep.subr.bf16.mxu0 %v5034_v0 }
 0x4ca   :  { %4552 = vmatpush3.bf16.msra.mxu0 %v4976_v55  ;;  %v5009_v55 = vld [vmem:[%s6372_s13 + $0x70] sm:$0xff]  }
 0x4cb   :  { %4553 = vmatprep.subr.bf16.mxu0 %v5034_v0 }
 0x4ce   :  { %4554 = vmatpush3.bf16.msra.mxu0 %v4977_v56  ;;  %v5010_v56 = vld [vmem:[%s6372_s13 + $0x18] sm:$0xff]  }
 0x4cf   :  { %4555 = vmatprep.subr.bf16.mxu0 %v5034_v0 }
 0x4d2   :  { %4556 = vmatpush3.bf16.msra.mxu0 %v4978_v57  ;;  %v5011_v57 = vld [vmem:[%s6372_s13 + $0x78] sm:$0xff]  }
 0x4d3   :  { %4557 = vmatprep.subr.bf16.mxu0 %v5034_v0 }
 0x4d6   :  { %4558 = vmatpush3.bf16.msra.mxu0 %v4979_v58  ;;  %v5012_v58 = vld [vmem:[%s6372_s13 + $0x20] sm:$0xff]  }
 0x4d7   :  { %4583 = vmatprep.subr.bf16.mxu0 %v4981_v60 }
 0x4d9   :  { %4560 = vmatmul.mubr.bf16.vlgmr.msra.gmra.mrb[36].mxu0 %v4010_v47  ;;  %v4997_v47 = vld [vmem:[%s6371_s11 + $0x88] sm:$0xff]  }
 0x4da   :  { %4584 = vmatpush3.bf16.msra.mxu0 %v4981_v60  ;;  %v5014_v60 = vld [vmem:[%s6372_s13 + $0x28] sm:$0xff]  }
 0x4db   :  { %4585 = vmatprep.subr.bf16.mxu0 %v4983_v62 }
 0x4de   :  { %4586 = vmatpush3.bf16.msra.mxu0 %v4983_v62  ;;  %v3855_v62 = vld [vmem:[%s6374_s12] ss:$0 sm:$0xff] }
 0x4df   :  { %4587 = vmatprep.subr.bf16.mxu0 %v4985_v63 }
 0x4e2   :  { %4588 = vmatpush3.bf16.msra.mxu0 %v4985_v63 }
 0x4e3   :  { %4589 = vmatprep.subr.bf16.mxu0 %v4987_v5 }
 0x4e6   :  { %4590 = vmatpush3.bf16.msra.mxu0 %v4987_v5 }
 0x4e7   :  { %4591 = vmatprep.subr.bf16.mxu0 %v4989_v2 }
 0x4ea   :  { %4592 = vmatpush3.bf16.msra.mxu0 %v4989_v2 }
 0x4eb   :  { %4593 = vmatprep.subr.bf16.mxu0 %v4991_v11 }
 0x4ee   :  { %4594 = vmatpush3.bf16.msra.mxu0 %v4991_v11  ;;  %v3857_v11 = vld [vmem:[%s6374_s12 + $0x1] ss:$0 sm:$0xff] }
 0x4ef   :  { %4595 = vmatprep.subr.bf16.mxu0 %v4993_v14 }
 0x4f2   :  { %4596 = vmatpush3.bf16.msra.mxu0 %v4993_v14 }
 0x4f3   :  { %4597 = vmatprep.subr.bf16.mxu0 %v4995_v16 }
 0x4f6   :  { %4598 = vmatpush3.bf16.msra.mxu0 %v4995_v16 }
 0x4f7   :  { %4623 = vmatprep.subr.bf16.mxu0 %v5034_v0 }
 0x56c   :  { %v1876_v19 = vpop.f32.mrb[28].mxu0 }
 0x56d   :  { %v4521_v20 = vpop.f32.mrb[29].mxu0  ;;  %v2109_v4 = vmul.f32 %v3794_v24, %v1876_v19 }
 0x56e   :  { %v1879_v21 = vpop.f32.mrb[30].mxu0 }
 0x56f   :  { %v4522_v23 = vpop.f32.mrb[31].mxu0  ;;  %v2121_v29 = vadd.f32 %v3796_v25, %v2109_v4  ;;  %v5016_v4 = vld [vmem:[%s6372_s13 + $0x30] sm:$0xff]  }
 0x571   :  { %v2125_v33 = vmax.f32 %v2121_v29, 0.0  ;;  %v5021_v29 = vld [vmem:[%s6372_s13 + $0x58] sm:$0xff]  }
 0x58c   :  { %v1982_v26 = vpop.f32.mrb[32].mxu0 }
 0x58d   :  { %v2096_v27 = vadd.f32 %v1982_v26, %v1879_v21  ;;  %v4541_v28 = vpop.f32.mrb[33].mxu0  ;;  %v5017_v26 = vld [vmem:[%s6372_s13 + $0x38] sm:$0xff]  }
 0x58e   :  { %v1985_v6 = vpop.f32.mrb[34].mxu0  ;;  %v5019_v28 = vld [vmem:[%s6372_s13 + $0x48] sm:$0xff]  }
 0x58f   :  { %v2110_v30 = vmul.f32 %v3794_v24, %v2096_v27  ;;  %v4542_v31 = vpop.f32.mrb[35].mxu0  ;;  %v5018_v27 = vld [vmem:[%s6372_s13 + $0x40] sm:$0xff]  }
 0x591   :  { %v2122_v32 = vadd.f32 %v3796_v25, %v2110_v30 }
 0x593   :  { %v2126_v34 = vmax.f32 %v2122_v32, 0.0 }
 0x595   :  { %v4011_v35 = vpack.c.bf16 %v2126_v34, %v2125_v33 }
 0x597   :  { %4579 = vmatprep.mubr.bf16.mxu1 %v4011_v35  ;;  %4599 = vmatprep.mubr.bf16.mxu0 %v4011_v35 }
 0x5ac   :  { %v2088_v36 = vpop.f32.mrb[36].mxu0 }
 0x5ad   :  { %v2100_v37 = vadd.f32 %v2088_v36, %v1985_v6  ;;  %v4561_v8 = vpop.f32.mrb[37].mxu0  ;;  %v5020_v6 = vld [vmem:[%s6372_s13 + $0x50] sm:$0xff]  }
 0x5ae   :  { %v2091_v38 = vpop.f32.mrb[38].mxu0 }
 0x5af   :  { %v2111_v39 = vmul.f32 %v3794_v24, %v2100_v37  ;;  %v2112_v40 = vmul.f32 %v3794_v24, %v2091_v38  ;;  %v4562_v42 = vpop.f32.mrb[39].mxu0 }
 0x5b1   :  { %v2123_v10 = vadd.f32 %v3796_v25, %v2111_v39  ;;  %v2124_v43 = vadd.f32 %v3796_v25, %v2112_v40 }
 0x5b3   :  { %v2127_v44 = vmax.f32 %v2123_v10, 0.0  ;;  %v2128_v45 = vmax.f32 %v2124_v43, 0.0 }
 0x5b5   :  { %v4012_v46 = vpack.c.bf16 %v2128_v45, %v2127_v44 }
 0x5b7   :  { %4580 = vmatmul.mubr.bf16.vlgmr.msra.gmra.mrb[36].mxu1 %v4012_v46  ;;  %4600 = vmatmul.mubr.bf16.vlgmr.msra.gmra.mrb[40].mxu0 %v4012_v46 }
 0x5b8   :  { %4604 = vmatpush3.bf16.msra.mxu1 %v4996_v17  ;;  %4619 = vmatprep.mubr.bf16.mxu1 %v4011_v35 }
 0x5b9   :  { %4605 = vmatprep.subr.bf16.mxu1 %v4997_v47  ;;  %4624 = vmatpush3.bf16.msra.mxu0 %v5004_v12 }
 0x5ba   :  { %4625 = vmatprep.subr.bf16.mxu0 %v5034_v0  ;;  %4635 = vmatprep.mubr.msk.bf16.mxu0 %vm5035_vm1, %v5034_v0 }
 0x5bc   :  { %4606 = vmatpush3.bf16.msra.mxu1 %v4997_v47 }
 0x5bd   :  { %4607 = vmatprep.subr.bf16.mxu1 %v4998_v18  ;;  %4626 = vmatpush3.bf16.msra.mxu0 %v5006_v22  ;;  %v5022_v22 = vld [vmem:[%s6375_s15] sm:$0xff]  }
 0x5be   :  { %4627 = vmatprep.subr.bf16.mxu0 %v5034_v0 }
 0x5c0   :  { %4608 = vmatpush3.bf16.msra.mxu1 %v4998_v18 }
 0x5c1   :  { %4609 = vmatprep.subr.bf16.mxu1 %v4999_v41  ;;  %4628 = vmatpush3.bf16.msra.mxu0 %v5008_v48  ;;  %v5023_v48 = vld [vmem:[%s6375_s15 + $0x8] sm:$0xff]  }
 0x5c2   :  { %4629 = vmatprep.subr.bf16.mxu0 %v5034_v0 }
 0x5c4   :  { %4610 = vmatpush3.bf16.msra.mxu1 %v4999_v41  ;;  %v5024_v41 = vld [vmem:[%s6375_s15 + $0x1c] sm:$0xff]  }
 0x5c5   :  { %4611 = vmatprep.subr.bf16.mxu1 %v5000_v49  ;;  %4630 = vmatpush3.bf16.msra.mxu0 %v5010_v56 }
 0x5c6   :  { %4631 = vmatprep.subr.bf16.mxu0 %v5034_v0 }
 0x5c8   :  { %4612 = vmatpush3.bf16.msra.mxu1 %v5000_v49  ;;  %v5026_v49 = vld [vmem:[%s6375_s15 + $0x24] sm:$0xff]  }
 0x5c9   :  { %4613 = vmatprep.subr.bf16.mxu1 %v5001_v51  ;;  %4632 = vmatpush3.bf16.msra.mxu0 %v5012_v58 }
 0x5ca   :  { %4633 = vmatprep.subr.bf16.mxu0 %v5034_v0 }
 0x5cc   :  { %4614 = vmatpush3.bf16.msra.mxu1 %v5001_v51  ;;  %v5025_v51 = vld [vmem:[%s6375_s15 + $0x10] sm:$0xff]  }
 0x5cd   :  { %4615 = vmatprep.subr.bf16.mxu1 %v5002_v50  ;;  %4634 = vmatpush3.bf16.msra.mxu0 %v5014_v60 }
 0x5ce   :  { %4647 = vmatprep.subr.bf16.mxu0 %v5034_v0 }
 0x5d0   :  { %4616 = vmatpush3.bf16.msra.mxu1 %v5002_v50  ;;  %v5027_v50 = vld [vmem:[%s6375_s15 + $0x2c] sm:$0xff]  }
 0x5d1   :  { %4617 = vmatprep.subr.bf16.mxu1 %v5003_v52 }
 0x5d4   :  { %4618 = vmatpush3.bf16.msra.mxu1 %v5003_v52  ;;  %v5028_v52 = vld [vmem:[%s6375_s15 + $0x18] ss:$0 sps:$4 sm:$0x33]  }
 0x5d5   :  { %4671 = vmatprep.subr.bf16.mxu1 %v5034_v0 }
 0x5d7   :  { %4620 = vmatmul.mubr.bf16.vlgmr.msra.gmra.mrb[40].mxu1 %v4012_v46 }
 0x5d8   :  { %4672 = vmatpush3.bf16.msra.mxu1 %v5005_v53  ;;  %4683 = vmatprep.mubr.msk.bf16.mxu1 %vm5035_vm1, %v5034_v0  ;;  %v5029_v53 = vld [vmem:[%s6375_s15 + $0x34] ss:$0 sps:$4 sm:$0x33]  }
 0x5d9   :  { %4673 = vmatprep.subr.bf16.mxu1 %v5034_v0 }
 0x5dc   :  { %4674 = vmatpush3.bf16.msra.mxu1 %v5007_v54  ;;  %v3034_v54 = vsel %vm719_vm3, %v5028_v52, 0 }
 0x5dd   :  { %4675 = vmatprep.subr.bf16.mxu1 %v5034_v0 }
 0x5e0   :  { %4676 = vmatpush3.bf16.msra.mxu1 %v5009_v55  ;;  %v3154_v55 = vsel %vm719_vm3, %v5029_v53, 0 }
 0x5e1   :  { %4677 = vmatprep.subr.bf16.mxu1 %v5034_v0 }
 0x5e4   :  { %4678 = vmatpush3.bf16.msra.mxu1 %v5011_v57 }
 0x5e5   :  { %4679 = vmatprep.subr.bf16.mxu1 %v5034_v0 }
 0x5e8   :  { %4680 = vmatpush3.bf16.msra.mxu1 %v5013_v59 }
 0x5e9   :  { %4681 = vmatprep.subr.bf16.mxu1 %v5034_v0 }
 0x5ec   :  { %4682 = vmatpush3.bf16.msra.mxu1 %v5015_v61 }
 0x5ed   :  { %4731 = vmatprep.subr.bf16.mxu1 %v5034_v0 }
 0x68a   :  { %v4581_v1 = vpop.f32.mrb[36].mxu1  ;;  %v4601_v63 = vpop.f32.mrb[40].mxu0 }
 0x68b   :  { %v2243_v3 = vpop.f32.mrb[37].mxu1  ;;  %v2357_v5 = vpop.f32.mrb[41].mxu0 }
 0x68c   :  { %v2504_v7 = vmul.f32 %v3855_v62, %v2243_v3  ;;  %v4582_v2 = vpop.f32.mrb[38].mxu1  ;;  %v4602_v9 = vpop.f32.mrb[42].mxu0 }
 0x68d   :  { %v2489_v13 = vadd.f32 %v4601_v63, %v4582_v2  ;;  %v2246_v14 = vpop.f32.mrb[39].mxu1  ;;  %v2360_v15 = vpop.f32.mrb[43].mxu0 }
 0x68e   :  { %v2487_v16 = vadd.f32 %v2357_v5, %v2246_v14  ;;  %v2488_v17 = vadd.f32 %v4581_v1, %v2360_v15  ;;  %v2518_v19 = vadd.f32 %v3857_v11, %v2504_v7 }
 0x690   :  { %v2505_v20 = vmul.f32 %v3855_v62, %v2487_v16  ;;  %v2524_v23 = vmax.f32 %v2518_v19, 0.0 }
 0x692   :  { %v2519_v21 = vadd.f32 %v3857_v11, %v2505_v20 }
 0x694   :  { %v2525_v24 = vmax.f32 %v2519_v21, 0.0 }
 0x696   :  { %v4013_v25 = vpack.c.bf16 %v2525_v24, %v2524_v23  ;;  %v6025_v24 = vld [vmem:[%s6376_s14] ss:$0 sm:$0xff] }
 0x698   :  { %4636 = vmatmul.mubr.msk.bf16.vlgmr.msra.gmra.mrb[44].mxu0 %vm1105_vm5, %v4013_v25  ;;  %4684 = vmatmul.mubr.msk.bf16.vlgmr.msra.gmra.mrb[44].mxu1 %vm1105_vm5, %v4013_v25 }
 0x699   :  { %4648 = vmatpush3.bf16.msra.mxu0 %v5016_v4  ;;  %4639 = vmatprep.mubr.msk.bf16.mxu0 %vm5035_vm1, %v5034_v0 }
 0x69a   :  { %4649 = vmatprep.subr.bf16.mxu0 %v5034_v0  ;;  %4687 = vmatprep.mubr.msk.bf16.mxu1 %vm5035_vm1, %v5034_v0 }
 0x69b   :  { %4732 = vmatpush3.bf16.msra.mxu1 %v5024_v41 }
 0x69c   :  { %4733 = vmatprep.subr.bf16.mxu1 %v5034_v0 }
 0x69d   :  { %4650 = vmatpush3.bf16.msra.mxu0 %v5017_v26 }
 0x69e   :  { %4651 = vmatprep.subr.bf16.mxu0 %v5034_v0 }
 0x69f   :  { %4734 = vmatpush3.bf16.msra.mxu1 %v5026_v49 }
 0x6a0   :  { %4735 = vmatprep.subr.bf16.mxu1 %v5034_v0 }
 0x6a1   :  { %4652 = vmatpush3.bf16.msra.mxu0 %v5018_v27 }
 0x6a2   :  { %4653 = vmatprep.subr.bf16.mxu0 %v5034_v0 }
 0x6a3   :  { %4736 = vmatpush3.bf16.msra.mxu1 %v5027_v50 }
 0x6a4   :  { %4737 = vmatprep.subr.bf16.mxu1 %v5034_v0 }
 0x6a5   :  { %4654 = vmatpush3.bf16.msra.mxu0 %v5019_v28 }
 0x6a6   :  { %4655 = vmatprep.subr.bf16.mxu0 %v5034_v0 }
 0x6a7   :  { %4738 = vmatpush3.bf16.msra.mxu1 %v3154_v55 }
 0x6a9   :  { %4656 = vmatpush3.bf16.msra.mxu0 %v5020_v6 }
 0x6aa   :  { %v4621_v30 = vpop.f32.mrb[40].mxu1  ;;  %4657 = vmatprep.subr.bf16.mxu0 %v5034_v0 }
 0x6ab   :  { %v2495_v31 = vadd.f32 %v4621_v30, %v4602_v9  ;;  %v2471_v32 = vpop.f32.mrb[41].mxu1 }
 0x6ac   :  { %v2493_v33 = vadd.f32 %v2488_v17, %v2471_v32  ;;  %v4622_v34 = vpop.f32.mrb[42].mxu1 }
 0x6ad   :  { %v2508_v35 = vmul.f32 %v3855_v62, %v2495_v31  ;;  %v2509_v36 = vmul.f32 %v4622_v34, %v3855_v62  ;;  %v2474_v37 = vpop.f32.mrb[43].mxu1  ;;  %4658 = vmatpush3.bf16.msra.mxu0 %v5021_v29  ;;  %v6033_v29 = vld [vmem:[%s6376_s14 + $0x1] ss:$0 sm:$0xff] }
 0x6ae   :  { %v2506_v8 = vmul.f32 %v3855_v62, %v2493_v33  ;;  %v2494_v38 = vadd.f32 %v2489_v13, %v2474_v37  ;;  %4695 = vmatprep.subr.bf16.mxu0 %v5034_v0 }
 0x6af   :  { %v2522_v39 = vadd.f32 %v3857_v11, %v2508_v35  ;;  %v2523_v40 = vadd.f32 %v3857_v11, %v2509_v36 }
 0x6b0   :  { %v2520_v42 = vadd.f32 %v3857_v11, %v2506_v8  ;;  %v2507_v10 = vmul.f32 %v3855_v62, %v2494_v38 }
 0x6b1   :  { %v2528_v43 = vmax.f32 %v2522_v39, 0.0  ;;  %v2529_v44 = vmax.f32 %v2523_v40, 0.0 }
 0x6b2   :  { %v2521_v45 = vadd.f32 %v3857_v11, %v2507_v10  ;;  %v2526_v47 = vmax.f32 %v2520_v42, 0.0 }
 0x6b3   :  { %v4015_v46 = vpack.c.bf16 %v2529_v44, %v2528_v43  ;;  %v5030_v43 = vld [vmem:[%s6375_s15 + $0x38] sm:$0xff]  }
 0x6b4   :  { %v2527_v12 = vmax.f32 %v2521_v45, 0.0 }
 0x6b6   :  { %v4014_v18 = vpack.c.bf16 %v2527_v12, %v2526_v47 }
 0x6b8   :  { %4640 = vmatmul.mubr.msk.bf16.gmra.mrb[48].mxu0 %vm1105_vm5, %v4014_v18  ;;  %4688 = vmatmul.mubr.msk.bf16.gmra.mrb[48].mxu1 %vm1105_vm5, %v4014_v18 }
 0x6b9   :  { %4643 = vmatprep.mubr.msk.bf16.mxu0 %vm5035_vm1, %v5034_v0  ;;  %4691 = vmatprep.mubr.msk.bf16.mxu1 %vm5035_vm1, %v5034_v0 }
 0x6c0   :  { %4644 = vmatmul.mubr.msk.bf16.gmra.mrb[52].mxu0 %vm1105_vm5, %v4015_v46  ;;  %4692 = vmatmul.mubr.msk.bf16.gmra.mrb[52].mxu1 %vm1105_vm5, %v4015_v46 }
 0x6c1   :  { %4659 = vmatprep.mubr.msk.bf16.mxu0 %vm5035_vm1, %v5034_v0  ;;  %4739 = vmatprep.mubr.msk.bf16.mxu1 %vm5035_vm1, %v5034_v0 }
 0x6c8   :  { %4660 = vmatmul.mubr.msk.bf16.vlgmr.msra.gmra.mrb[56].mxu0 %vm1105_vm5, %v4013_v25 }
 0x6c9   :  { %4663 = vmatprep.mubr.msk.bf16.mxu0 %vm5035_vm1, %v5034_v0  ;;  %4696 = vmatpush3.bf16.msra.mxu0 %v5022_v22 }
 0x6ca   :  { %4697 = vmatprep.subr.bf16.mxu0 %v5034_v0 }
 0x6cd   :  { %4698 = vmatpush3.bf16.msra.mxu0 %v5023_v48 }
 0x6ce   :  { %4699 = vmatprep.subr.bf16.mxu0 %v5034_v0 }
 0x6d0   :  { %4664 = vmatmul.mubr.msk.bf16.gmra.mrb[60].mxu0 %vm1105_vm5, %v4014_v18 }
 0x6d1   :  { %4667 = vmatprep.mubr.msk.bf16.mxu0 %vm5035_vm1, %v5034_v0  ;;  %4700 = vmatpush3.bf16.msra.mxu0 %v5025_v51  ;;  %v5031_v51 = vld [vmem:[%s6375_s15 + $0x40] sm:$0xff]  }
 0x6d2   :  { %4701 = vmatprep.subr.bf16.mxu0 %v5034_v0 }
 0x6d5   :  { %4702 = vmatpush3.bf16.msra.mxu0 %v3034_v54 }
 0x6d6   :  { %4767 = vmatprep.subr.bf16.mxu0 %v5034_v0 }
 0x6d8   :  { %4668 = vmatmul.mubr.msk.bf16.gmra.mrb[64].mxu0 %vm1105_vm5, %v4015_v46 }
 0x6d9   :  { %4703 = vmatprep.mubr.msk.bf16.mxu0 %vm5035_vm1, %v5034_v0 }
 0x76b   :  { %v2642_v56 = vpop.f32.mrb[44].mxu0  ;;  %v2854_v57 = vpop.f32.mrb[44].mxu1 }
 0x76c   :  { %v4637_v58 = vpop.f32.mrb[45].mxu0  ;;  %v4685_v59 = vpop.f32.mrb[45].mxu1  ;;  %v2891_v6 = vmul.f32 %v6025_v24, %v2642_v56 }
 0x76d   :  { %v2645_v60 = vpop.f32.mrb[46].mxu0  ;;  %v2857_v61 = vpop.f32.mrb[46].mxu1 }
 0x76e   :  { %v2878_v62 = vadd.f32 %v2854_v57, %v2645_v60  ;;  %v4638_v1 = vpop.f32.mrb[47].mxu0  ;;  %v4686_v63 = vpop.f32.mrb[47].mxu1  ;;  %v2912_v32 = vadd.f32 %v6033_v29, %v2891_v6 }
 0x76f   :  { %v5032_v1 = vld [vmem:[%s6375_s15 + $0x48] sm:$0xff]  }
 0x770   :  { %v2893_v30 = vmul.f32 %v6025_v24, %v2878_v62  ;;  %v2925_v39 = vmax.f32 %v2912_v32, 0.0 }
 0x772   :  { %v2914_v36 = vadd.f32 %v6033_v29, %v2893_v30 }
 0x774   :  { %v2927_v44 = vmax.f32 %v2914_v36, 0.0 }
 0x78b   :  { %v2650_v3 = vpop.f32.mrb[48].mxu0  ;;  %v2862_v5 = vpop.f32.mrb[48].mxu1 }
 0x78c   :  { %v2879_v7 = vadd.f32 %v2857_v61, %v2650_v3  ;;  %v4641_v2 = vpop.f32.mrb[49].mxu0  ;;  %v4689_v9 = vpop.f32.mrb[49].mxu1  ;;  %v5033_v3 = vld [vmem:[%s6375_s15 + $0x50] ss:$0 sps:$4 sm:$0x33]  }
 0x78d   :  { %v2653_v11 = vpop.f32.mrb[50].mxu0  ;;  %v2865_v13 = vpop.f32.mrb[50].mxu1 }
 0x78e   :  { %v2880_v14 = vadd.f32 %v2862_v5, %v2653_v11  ;;  %v4642_v15 = vpop.f32.mrb[51].mxu0  ;;  %v4690_v16 = vpop.f32.mrb[51].mxu1  ;;  %v2895_v40 = vmul.f32 %v6025_v24, %v2879_v7 }
 0x790   :  { %v2897_v45 = vmul.f32 %v6025_v24, %v2880_v14  ;;  %v2916_v18 = vadd.f32 %v6033_v29, %v2895_v40 }
 0x792   :  { %v2918_v50 = vadd.f32 %v6033_v29, %v2897_v45  ;;  %v2929_v55 = vmax.f32 %v2916_v18, 0.0 }
 0x793   :  { %v2658_v17 = vpop.f32.mrb[52].mxu0  ;;  %v2870_v19 = vpop.f32.mrb[52].mxu1 }
 0x794   :  { %v2881_v20 = vadd.f32 %v2865_v13, %v2658_v17  ;;  %v4645_v21 = vpop.f32.mrb[53].mxu0  ;;  %v4693_v23 = vpop.f32.mrb[53].mxu1  ;;  %v2931_v59 = vmax.f32 %v2918_v50, 0.0  ;;  %v3274_v17 = vsel %vm719_vm3, %v5033_v3, 0 }
 0x795   :  { %v2661_v4 = vpop.f32.mrb[54].mxu0  ;;  %v6027_v25 = vpop.f32.mrb[54].mxu1 }
 0x796   :  { %v2882_v26 = vadd.f32 %v2870_v19, %v2661_v4  ;;  %v4646_v27 = vpop.f32.mrb[55].mxu0  ;;  %v4694_v28 = vpop.f32.mrb[55].mxu1  ;;  %v2899_v56 = vmul.f32 %v6025_v24, %v2881_v20 }
 0x797   :  { %v2903_v28 = vmul.f32 %v6025_v24, %v6027_v25 }
 0x798   :  { %v2901_v60 = vmul.f32 %v6025_v24, %v2882_v26  ;;  %v2920_v5 = vadd.f32 %v6033_v29, %v2899_v56 }
 0x799   :  { %v2924_v6 = vadd.f32 %v6033_v29, %v2903_v28 }
 0x79a   :  { %v2922_v13 = vadd.f32 %v6033_v29, %v2901_v60  ;;  %v2933_v19 = vmax.f32 %v2920_v5, 0.0 }
 0x79b   :  { %v2748_v31 = vpop.f32.mrb[56].mxu0  ;;  %v2937_v30 = vmax.f32 %v2924_v6, 0.0 }
 0x79c   :  { %v2892_v33 = vmul.f32 %v6025_v24, %v2748_v31  ;;  %v4661_v34 = vpop.f32.mrb[57].mxu0  ;;  %v2935_v23 = vmax.f32 %v2922_v13, 0.0 }
 0x79d   :  { %v2751_v35 = vpop.f32.mrb[58].mxu0  ;;  %v4022_v31 = vpack.c.bf16 %v2937_v30, %v2937_v30 }
 0x79e   :  { %v2913_v37 = vadd.f32 %v6033_v29, %v2892_v33  ;;  %v2894_v8 = vmul.f32 %v6025_v24, %v2751_v35  ;;  %v4662_v38 = vpop.f32.mrb[59].mxu0 }
 0x7a0   :  { %v2926_v42 = vmax.f32 %v2913_v37, 0.0  ;;  %v2915_v10 = vadd.f32 %v6033_v29, %v2894_v8 }
 0x7a2   :  { %v6047_v46 = vpack.c.bf16 %v2926_v42, %v2925_v39  ;;  %v2928_v47 = vmax.f32 %v2915_v10, 0.0 }
 0x7a3   :  { %v2756_v12 = vpop.f32.mrb[60].mxu0 }
 0x7a4   :  { %v6050_v22 = vpack.c.bf16 %v2928_v47, %v2927_v44  ;;  %v2896_v41 = vmul.f32 %v6025_v24, %v2756_v12  ;;  %v4665_v48 = vpop.f32.mrb[61].mxu0  ;;  %4704 = vmatmul.mubr.msk.bf16.vlgmr.msra.gmra.mrb[68].mxu0 %vm709_vm4, %v6047_v46  ;;  %4740 = vmatmul.mubr.msk.bf16.vlgmr.msra.gmra.mrb[56].mxu1 %vm709_vm4, %v6047_v46 }
 0x7a5   :  { %v2759_v49 = vpop.f32.mrb[62].mxu0  ;;  %4768 = vmatpush3.bf16.msra.mxu0 %v5030_v43  ;;  %4707 = vmatprep.mubr.msk.bf16.mxu0 %vm5035_vm1, %v5034_v0 }
 0x7a6   :  { %v2917_v52 = vadd.f32 %v6033_v29, %v2896_v41  ;;  %v2898_v53 = vmul.f32 %v6025_v24, %v2759_v49  ;;  %v4666_v54 = vpop.f32.mrb[63].mxu0  ;;  %4743 = vmatprep.mubr.msk.bf16.mxu1 %vm5035_vm1, %v5034_v0  ;;  %4769 = vmatprep.subr.bf16.mxu0 %v5034_v0 }
 0x7a8   :  { %v2930_v57 = vmax.f32 %v2917_v52, 0.0  ;;  %v2919_v58 = vadd.f32 %v6033_v29, %v2898_v53 }
 0x7a9   :  { %4770 = vmatpush3.bf16.msra.mxu0 %v5031_v51 }
 0x7aa   :  { %v4018_v61 = vpack.c.bf16 %v2930_v57, %v2929_v55  ;;  %v2932_v62 = vmax.f32 %v2919_v58, 0.0  ;;  %4771 = vmatprep.subr.bf16.mxu0 %v5034_v0 }
 0x7ab   :  { %v2764_v63 = vpop.f32.mrb[64].mxu0 }
 0x7ac   :  { %v4019_v7 = vpack.c.bf16 %v2932_v62, %v2931_v59  ;;  %v2900_v2 = vmul.f32 %v6025_v24, %v2764_v63  ;;  %v4669_v9 = vpop.f32.mrb[65].mxu0  ;;  %4708 = vmatmul.mubr.msk.bf16.gmra.mrb[72].mxu0 %vm709_vm4, %v6050_v22  ;;  %4744 = vmatmul.mubr.msk.bf16.gmra.mrb[60].mxu1 %vm709_vm4, %v6050_v22 }
 0x7ad   :  { %v2767_v11 = vpop.f32.mrb[66].mxu0  ;;  %4711 = vmatprep.mubr.msk.bf16.mxu0 %vm5035_vm1, %v5034_v0  ;;  %4747 = vmatprep.mubr.msk.bf16.mxu1 %vm5035_vm1, %v5034_v0 }
 0x7ae   :  { %v2921_v14 = vadd.f32 %v6033_v29, %v2900_v2  ;;  %v2902_v15 = vmul.f32 %v6025_v24, %v2767_v11  ;;  %v4670_v16 = vpop.f32.mrb[67].mxu0  ;;  %4772 = vmatpush3.bf16.msra.mxu0 %v5032_v1  ;;  %v6142_v24 = vld [vmem:[%s6377_s16] ss:$0 sm:$0xff] }
 0x7af   :  { %4773 = vmatprep.subr.bf16.mxu0 %v5034_v0  ;;  %v3412_v25 = vmul.f32 0.0, %v6142_v24 }
 0x7b0   :  { %v2934_v20 = vmax.f32 %v2921_v14, 0.0  ;;  %v2923_v21 = vadd.f32 %v6033_v29, %v2902_v15  ;;  %v6148_v29 = vld [vmem:[%s6377_s16 + $0x1] ss:$0 sm:$0xff] }
 0x7b1   :  { %v3448_v32 = vadd.f32 %v6148_v29, %v3412_v25 }
 0x7b2   :  { %v4020_v4 = vpack.c.bf16 %v2934_v20, %v2933_v19  ;;  %v2936_v26 = vmax.f32 %v2923_v21, 0.0  ;;  %4774 = vmatpush3.bf16.msra.mxu0 %v3274_v17 }
 0x7b3   :  { %v3476_v33 = vmax.f32 %v3448_v32, 0.0 }
 0x7b4   :  { %v4021_v27 = vpack.c.bf16 %v2936_v26, %v2935_v23  ;;  %4712 = vmatmul.mubr.msk.bf16.gmra.mrb[76].mxu0 %vm709_vm4, %v4018_v61  ;;  %4748 = vmatmul.mubr.msk.bf16.gmra.mrb[64].mxu1 %vm709_vm4, %v4018_v61 }
 0x7b5   :  { %4715 = vmatprep.mubr.msk.bf16.mxu0 %vm5035_vm1, %v5034_v0  ;;  %4751 = vmatprep.mubr.msk.bf16.mxu1 %vm5035_vm1, %v5034_v0  ;;  %3504 = vst.msk [vmem:[%s6378_s18 + $0xd8] sm:$0xff] %vm161_vm2, %v3476_v33 }
 0x7bc   :  { %4716 = vmatmul.mubr.msk.bf16.gmra.mrb[80].mxu0 %vm709_vm4, %v4019_v7  ;;  %4752 = vmatmul.mubr.msk.bf16.gmra.mrb[68].mxu1 %vm709_vm4, %v4019_v7 }
 0x7bd   :  { %4719 = vmatprep.mubr.msk.bf16.mxu0 %vm5035_vm1, %v5034_v0  ;;  %4755 = vmatprep.mubr.msk.bf16.mxu1 %vm5035_vm1, %v5034_v0 }
 0x7c4   :  { %4720 = vmatmul.mubr.msk.bf16.gmra.mrb[84].mxu0 %vm709_vm4, %v4020_v4  ;;  %4756 = vmatmul.mubr.msk.bf16.gmra.mrb[72].mxu1 %vm709_vm4, %v4020_v4 }
 0x7c5   :  { %4723 = vmatprep.mubr.msk.bf16.mxu0 %vm5035_vm1, %v5034_v0  ;;  %4759 = vmatprep.mubr.msk.bf16.mxu1 %vm5035_vm1, %v5034_v0 }
 0x7cc   :  { %4724 = vmatmul.mubr.msk.bf16.gmra.mrb[88].mxu0 %vm709_vm4, %v4021_v27  ;;  %4760 = vmatmul.mubr.msk.bf16.gmra.mrb[76].mxu1 %vm709_vm4, %v4021_v27 }
 0x7cd   :  { %4727 = vmatprep.mubr.msk.bf16.mxu0 %vm5035_vm1, %v5034_v0  ;;  %4763 = vmatprep.mubr.msk.bf16.mxu1 %vm5035_vm1, %v5034_v0 }
 0x7d4   :  { %4728 = vmatmul.mubr.msk.bf16.gmra.mrb[92].mxu0 %vm709_vm4, %v4022_v31  ;;  %4764 = vmatmul.mubr.msk.bf16.gmra.mrb[80].mxu1 %vm709_vm4, %v4022_v31 }
 0x7d5   :  { %4775 = vmatprep.mubr.msk.bf16.mxu0 %vm5035_vm1, %v5034_v0 }
 0x7dc   :  { %4776 = vmatmul.mubr.msk.bf16.vlgmr.msra.gmra.mrb[96].mxu0 %vm709_vm4, %v6047_v46 }
 0x7dd   :  { %4779 = vmatprep.mubr.msk.bf16.mxu0 %vm5035_vm1, %v5034_v0 }
 0x7e4   :  { %4780 = vmatmul.mubr.msk.bf16.gmra.mrb[100].mxu0 %vm709_vm4, %v6050_v22 }
 0x7e5   :  { %4783 = vmatprep.mubr.msk.bf16.mxu0 %vm5035_vm1, %v5034_v0 }
 0x7ec   :  { %4784 = vmatmul.mubr.msk.bf16.gmra.mrb[104].mxu0 %vm709_vm4, %v4018_v61 }
 0x7ed   :  { %4787 = vmatprep.mubr.msk.bf16.mxu0 %vm5035_vm1, %v5034_v0 }
 0x7f4   :  { %4788 = vmatmul.mubr.msk.bf16.gmra.mrb[108].mxu0 %vm709_vm4, %v4019_v7 }
 0x7f5   :  { %4791 = vmatprep.mubr.msk.bf16.mxu0 %vm5035_vm1, %v5034_v0 }
 0x7fc   :  { %4792 = vmatmul.mubr.msk.bf16.gmra.mrb[112].mxu0 %vm709_vm4, %v4020_v4 }
 0x7fd   :  { %4795 = vmatprep.mubr.msk.bf16.mxu0 %vm5035_vm1, %v5034_v0 }
 0x804   :  { %4796 = vmatmul.mubr.msk.bf16.gmra.mrb[116].mxu0 %vm709_vm4, %v4021_v27 }
 0x805   :  { %4799 = vmatprep.mubr.msk.bf16.mxu0 %vm5035_vm1, %v5034_v0 }
 0x80c   :  { %4800 = vmatmul.mubr.msk.bf16.gmra.mrb[120].mxu0 %vm709_vm4, %v4022_v31 }
 0x877   :  { %v3070_v34 = vpop.f32.mrb[68].mxu0  ;;  %v3190_v35 = vpop.f32.mrb[56].mxu1 }
 0x878   :  { %v3385_v36 = vmul.f32 %v6142_v24, %v3070_v34  ;;  %v3386_v37 = vmul.f32 %v6142_v24, %v3190_v35  ;;  %v4705_v8 = vpop.f32.mrb[69].mxu0  ;;  %v4741_v38 = vpop.f32.mrb[57].mxu1 }
 0x879   :  { %v6164_v39 = vpop.f32.mrb[70].mxu0  ;;  %v3193_v40 = vpop.f32.mrb[58].mxu1 }
 0x87a   :  { %v3421_v42 = vadd.f32 %v6148_v29, %v3385_v36  ;;  %v3422_v10 = vadd.f32 %v6148_v29, %v3386_v37  ;;  %v3388_v43 = vmul.f32 %v6142_v24, %v3193_v40  ;;  %v4706_v0 = vpop.f32.mrb[71].mxu0  ;;  %v4742_v44 = vpop.f32.mrb[59].mxu1 }
 0x87c   :  { %v3449_v45 = vmax.f32 %v3421_v42, 0.0  ;;  %v3450_v46 = vmax.f32 %v3422_v10, 0.0  ;;  %v3424_v47 = vadd.f32 %v6148_v29, %v3388_v43 }
 0x87e   :  { %3477 = vst.msk [vmem:[%s6378_s18] sm:$0xff] %vm161_vm2, %v3449_v45  ;;  %3478 = vst.msk [vmem:[%s6378_s18 + $0x8] sm:$0xff] %vm161_vm2, %v3450_v46  ;;  %v3452_v12 = vmax.f32 %v3424_v47, 0.0 }
 0x87f   :  { %v6178_v18 = vpop.f32.mrb[72].mxu0  ;;  %v3198_v22 = vpop.f32.mrb[60].mxu1 }
 0x880   :  { %3480 = vst.msk [vmem:[%s6378_s18 + $0x18] sm:$0xff] %vm161_vm2, %v3452_v12  ;;  %v3390_v41 = vmul.f32 %v6142_v24, %v3198_v22  ;;  %v4709_v48 = vpop.f32.mrb[73].mxu0  ;;  %v4745_v49 = vpop.f32.mrb[61].mxu1 }
 0x881   :  { %v6185_v51 = vpop.f32.mrb[74].mxu0  ;;  %v3201_v50 = vpop.f32.mrb[62].mxu1 }
 0x882   :  { %v3426_v52 = vadd.f32 %v6148_v29, %v3390_v41  ;;  %v3392_v53 = vmul.f32 %v6142_v24, %v3201_v50  ;;  %v4710_v54 = vpop.f32.mrb[75].mxu0  ;;  %v4746_v55 = vpop.f32.mrb[63].mxu1 }
 0x884   :  { %v3454_v56 = vmax.f32 %v3426_v52, 0.0  ;;  %v3428_v57 = vadd.f32 %v6148_v29, %v3392_v53 }
 0x886   :  { %3482 = vst.msk [vmem:[%s6378_s18 + $0x28] sm:$0xff] %vm161_vm2, %v3454_v56  ;;  %v3456_v58 = vmax.f32 %v3428_v57, 0.0 }
 0x887   :  { %v6194_v59 = vpop.f32.mrb[76].mxu0  ;;  %v3206_v60 = vpop.f32.mrb[64].mxu1 }
 0x888   :  { %3484 = vst.msk [vmem:[%s6378_s18 + $0x38] sm:$0xff] %vm161_vm2, %v3456_v58  ;;  %v3394_v61 = vmul.f32 %v6142_v24, %v3206_v60  ;;  %v4713_v62 = vpop.f32.mrb[77].mxu0  ;;  %v4749_v1 = vpop.f32.mrb[65].mxu1 }
 0x889   :  { %v6201_v63 = vpop.f32.mrb[78].mxu0  ;;  %v3209_v3 = vpop.f32.mrb[66].mxu1 }
 0x88a   :  { %v3430_v5 = vadd.f32 %v6148_v29, %v3394_v61  ;;  %v3396_v7 = vmul.f32 %v6142_v24, %v3209_v3  ;;  %v4714_v2 = vpop.f32.mrb[79].mxu0  ;;  %v4750_v9 = vpop.f32.mrb[67].mxu1 }
 0x88c   :  { %v3458_v11 = vmax.f32 %v3430_v5, 0.0  ;;  %v3432_v13 = vadd.f32 %v6148_v29, %v3396_v7 }
 0x88e   :  { %3486 = vst.msk [vmem:[%s6378_s18 + $0x48] sm:$0xff] %vm161_vm2, %v3458_v11  ;;  %v3460_v14 = vmax.f32 %v3432_v13, 0.0 }
 0x88f   :  { %v6210_v15 = vpop.f32.mrb[80].mxu0  ;;  %v3214_v16 = vpop.f32.mrb[68].mxu1 }
 0x890   :  { %3488 = vst.msk [vmem:[%s6378_s18 + $0x58] sm:$0xff] %vm161_vm2, %v3460_v14  ;;  %v3398_v17 = vmul.f32 %v6142_v24, %v3214_v16  ;;  %v4717_v19 = vpop.f32.mrb[81].mxu0  ;;  %v4753_v20 = vpop.f32.mrb[69].mxu1 }
 0x891   :  { %v6217_v21 = vpop.f32.mrb[82].mxu0  ;;  %v3217_v23 = vpop.f32.mrb[70].mxu1 }
 0x892   :  { %v3434_v4 = vadd.f32 %v6148_v29, %v3398_v17  ;;  %v3400_v26 = vmul.f32 %v6142_v24, %v3217_v23  ;;  %v4718_v27 = vpop.f32.mrb[83].mxu0  ;;  %v4754_v28 = vpop.f32.mrb[71].mxu1 }
 0x894   :  { %v3462_v6 = vmax.f32 %v3434_v4, 0.0  ;;  %v3436_v30 = vadd.f32 %v6148_v29, %v3400_v26 }
 0x896   :  { %3490 = vst.msk [vmem:[%s6378_s18 + $0x68] sm:$0xff] %vm161_vm2, %v3462_v6  ;;  %v3464_v31 = vmax.f32 %v3436_v30, 0.0 }
 0x897   :  { %v6226_v25 = vpop.f32.mrb[84].mxu0  ;;  %v3222_v32 = vpop.f32.mrb[72].mxu1 }
 0x898   :  { %3492 = vst.msk [vmem:[%s6378_s18 + $0x78] sm:$0xff] %vm161_vm2, %v3464_v31  ;;  %v3402_v33 = vmul.f32 %v6142_v24, %v3222_v32  ;;  %v4721_v34 = vpop.f32.mrb[85].mxu0  ;;  %v4757_v35 = vpop.f32.mrb[73].mxu1 }
 0x899   :  { %v6233_v36 = vpop.f32.mrb[86].mxu0  ;;  %v3225_v37 = vpop.f32.mrb[74].mxu1 }
 0x89a   :  { %v3438_v8 = vadd.f32 %v6148_v29, %v3402_v33  ;;  %v3404_v38 = vmul.f32 %v6142_v24, %v3225_v37  ;;  %v4722_v40 = vpop.f32.mrb[87].mxu0  ;;  %v4758_v42 = vpop.f32.mrb[75].mxu1 }
 0x89c   :  { %v3466_v10 = vmax.f32 %v3438_v8, 0.0  ;;  %v3440_v43 = vadd.f32 %v6148_v29, %v3404_v38 }
 0x89e   :  { %3494 = vst.msk [vmem:[%s6378_s18 + $0x88] sm:$0xff] %vm161_vm2, %v3466_v10  ;;  %v3468_v0 = vmax.f32 %v3440_v43, 0.0 }
 0x89f   :  { %v6242_v44 = vpop.f32.mrb[88].mxu0  ;;  %v3230_v45 = vpop.f32.mrb[76].mxu1 }
 0x8a0   :  { %3496 = vst.msk [vmem:[%s6378_s18 + $0x98] sm:$0xff] %vm161_vm2, %v3468_v0  ;;  %v3406_v46 = vmul.f32 %v6142_v24, %v3230_v45  ;;  %v4725_v47 = vpop.f32.mrb[89].mxu0  ;;  %v4761_v12 = vpop.f32.mrb[77].mxu1 }
 0x8a1   :  { %v6249_v22 = vpop.f32.mrb[90].mxu0  ;;  %v3233_v41 = vpop.f32.mrb[78].mxu1 }
 0x8a2   :  { %v3442_v48 = vadd.f32 %v6148_v29, %v3406_v46  ;;  %v3408_v49 = vmul.f32 %v6142_v24, %v3233_v41  ;;  %v4726_v50 = vpop.f32.mrb[91].mxu0  ;;  %v4762_v52 = vpop.f32.mrb[79].mxu1 }
 0x8a4   :  { %v3470_v53 = vmax.f32 %v3442_v48, 0.0  ;;  %v3444_v54 = vadd.f32 %v6148_v29, %v3408_v49 }
 0x8a6   :  { %3498 = vst.msk [vmem:[%s6378_s18 + $0xa8] sm:$0xff] %vm161_vm2, %v3470_v53  ;;  %v3472_v55 = vmax.f32 %v3444_v54, 0.0 }
 0x8a7   :  { %v6258_v56 = vpop.f32.mrb[92].mxu0  ;;  %v3238_v57 = vpop.f32.mrb[80].mxu1 }
 0x8a8   :  { %3500 = vst.msk [vmem:[%s6378_s18 + $0xb8] sm:$0xff] %vm161_vm2, %v3472_v55  ;;  %v3410_v58 = vmul.f32 %v6142_v24, %v3238_v57  ;;  %v4729_v60 = vpop.f32.mrb[93].mxu0  ;;  %v4765_v61 = vpop.f32.mrb[81].mxu1 }
 0x8a9   :  { %v3121_v62 = vpop.f32.mrb[94].mxu0  ;;  %v3241_v1 = vpop.f32.mrb[82].mxu1 }
 0x8aa   :  { %v3446_v3 = vadd.f32 %v6148_v29, %v3410_v58  ;;  %v4730_v5 = vpop.f32.mrb[95].mxu0  ;;  %v4766_v7 = vpop.f32.mrb[83].mxu1 }
 0x8ac   :  { %v3474_v2 = vmax.f32 %v3446_v3, 0.0 }
 0x8ae   :  { %3502 = vst.msk [vmem:[%s6378_s18 + $0xc8] sm:$0xff] %vm161_vm2, %v3474_v2 }
 0x8af   :  { %v3310_v9 = vpop.f32.mrb[96].mxu0 }
 0x8b0   :  { %v3365_v11 = vadd.f32 %v3310_v9, %v6164_v39  ;;  %v4777_v13 = vpop.f32.mrb[97].mxu0 }
 0x8b1   :  { %v3313_v14 = vpop.f32.mrb[98].mxu0 }
 0x8b2   :  { %v3387_v16 = vmul.f32 %v6142_v24, %v3365_v11  ;;  %v3366_v17 = vadd.f32 %v3313_v14, %v6178_v18  ;;  %v4778_v19 = vpop.f32.mrb[99].mxu0 }
 0x8b4   :  { %v3423_v20 = vadd.f32 %v6148_v29, %v3387_v16  ;;  %v3389_v23 = vmul.f32 %v6142_v24, %v3366_v17 }
 0x8b6   :  { %v3451_v4 = vmax.f32 %v3423_v20, 0.0  ;;  %v3425_v26 = vadd.f32 %v6148_v29, %v3389_v23 }
 0x8b7   :  { %v3318_v27 = vpop.f32.mrb[100].mxu0 }
 0x8b8   :  { %3479 = vst.msk [vmem:[%s6378_s18 + $0x10] sm:$0xff] %vm161_vm2, %v3451_v4  ;;  %v3453_v39 = vmax.f32 %v3425_v26, 0.0  ;;  %v3367_v28 = vadd.f32 %v3318_v27, %v6185_v51  ;;  %v4781_v6 = vpop.f32.mrb[101].mxu0 }
 0x8b9   :  { %v3321_v30 = vpop.f32.mrb[102].mxu0 }
 0x8ba   :  { %3481 = vst.msk [vmem:[%s6378_s18 + $0x20] sm:$0xff] %vm161_vm2, %v3453_v39  ;;  %v3391_v18 = vmul.f32 %v6142_v24, %v3367_v28  ;;  %v3368_v31 = vadd.f32 %v3321_v30, %v6194_v59  ;;  %v4782_v32 = vpop.f32.mrb[103].mxu0 }
 0x8bc   :  { %v3427_v33 = vadd.f32 %v6148_v29, %v3391_v18  ;;  %v3393_v34 = vmul.f32 %v6142_v24, %v3368_v31 }
 0x8be   :  { %v3455_v35 = vmax.f32 %v3427_v33, 0.0  ;;  %v3429_v37 = vadd.f32 %v6148_v29, %v3393_v34 }
 0x8bf   :  { %v3326_v51 = vpop.f32.mrb[104].mxu0 }
 0x8c0   :  { %3483 = vst.msk [vmem:[%s6378_s18 + $0x30] sm:$0xff] %vm161_vm2, %v3455_v35  ;;  %v3457_v8 = vmax.f32 %v3429_v37, 0.0  ;;  %v3369_v38 = vadd.f32 %v3326_v51, %v6201_v63  ;;  %v4785_v40 = vpop.f32.mrb[105].mxu0 }
 0x8c1   :  { %v3329_v42 = vpop.f32.mrb[106].mxu0 }
 0x8c2   :  { %3485 = vst.msk [vmem:[%s6378_s18 + $0x40] sm:$0xff] %vm161_vm2, %v3457_v8  ;;  %v3395_v59 = vmul.f32 %v6142_v24, %v3369_v38  ;;  %v3370_v10 = vadd.f32 %v3329_v42, %v6210_v15  ;;  %v4786_v43 = vpop.f32.mrb[107].mxu0 }
 0x8c4   :  { %v3431_v0 = vadd.f32 %v6148_v29, %v3395_v59  ;;  %v3397_v45 = vmul.f32 %v6142_v24, %v3370_v10 }
 0x8c6   :  { %v3459_v46 = vmax.f32 %v3431_v0, 0.0  ;;  %v3433_v47 = vadd.f32 %v6148_v29, %v3397_v45 }
 0x8c7   :  { %v3334_v63 = vpop.f32.mrb[108].mxu0 }
 0x8c8   :  { %3487 = vst.msk [vmem:[%s6378_s18 + $0x50] sm:$0xff] %vm161_vm2, %v3459_v46  ;;  %v3461_v12 = vmax.f32 %v3433_v47, 0.0  ;;  %v3371_v41 = vadd.f32 %v3334_v63, %v6217_v21  ;;  %v4789_v48 = vpop.f32.mrb[109].mxu0 }
 0x8c9   :  { %v3337_v49 = vpop.f32.mrb[110].mxu0 }
 0x8ca   :  { %3489 = vst.msk [vmem:[%s6378_s18 + $0x60] sm:$0xff] %vm161_vm2, %v3461_v12  ;;  %v3399_v15 = vmul.f32 %v6142_v24, %v3371_v41  ;;  %v3372_v50 = vadd.f32 %v3337_v49, %v6226_v25  ;;  %v4790_v52 = vpop.f32.mrb[111].mxu0 }
 0x8cc   :  { %v3435_v53 = vadd.f32 %v6148_v29, %v3399_v15  ;;  %v3401_v54 = vmul.f32 %v6142_v24, %v3372_v50 }
 0x8ce   :  { %v3463_v55 = vmax.f32 %v3435_v53, 0.0  ;;  %v3437_v57 = vadd.f32 %v6148_v29, %v3401_v54 }
 0x8cf   :  { %v3342_v21 = vpop.f32.mrb[112].mxu0 }
 0x8d0   :  { %3491 = vst.msk [vmem:[%s6378_s18 + $0x70] sm:$0xff] %vm161_vm2, %v3463_v55  ;;  %v3465_v58 = vmax.f32 %v3437_v57, 0.0  ;;  %v3373_v60 = vadd.f32 %v3342_v21, %v6233_v36  ;;  %v4793_v61 = vpop.f32.mrb[113].mxu0 }
 0x8d1   :  { %v3345_v62 = vpop.f32.mrb[114].mxu0 }
 0x8d2   :  { %3493 = vst.msk [vmem:[%s6378_s18 + $0x80] sm:$0xff] %vm161_vm2, %v3465_v58  ;;  %v3403_v25 = vmul.f32 %v6142_v24, %v3373_v60  ;;  %v3374_v1 = vadd.f32 %v3345_v62, %v6242_v44  ;;  %v4794_v3 = vpop.f32.mrb[115].mxu0 }
 0x8d4   :  { %v3439_v5 = vadd.f32 %v6148_v29, %v3403_v25  ;;  %v3405_v7 = vmul.f32 %v6142_v24, %v3374_v1 }
 0x8d6   :  { %v3467_v2 = vmax.f32 %v3439_v5, 0.0  ;;  %v3441_v9 = vadd.f32 %v6148_v29, %v3405_v7 }
 0x8d7   :  { %v3350_v36 = vpop.f32.mrb[116].mxu0 }
 0x8d8   :  { %3495 = vst.msk [vmem:[%s6378_s18 + $0x90] sm:$0xff] %vm161_vm2, %v3467_v2  ;;  %v3469_v11 = vmax.f32 %v3441_v9, 0.0  ;;  %v3375_v13 = vadd.f32 %v3350_v36, %v6249_v22  ;;  %v4797_v14 = vpop.f32.mrb[117].mxu0 }
 0x8d9   :  { %v3353_v16 = vpop.f32.mrb[118].mxu0 }
 0x8da   :  { %3497 = vst.msk [vmem:[%s6378_s18 + $0xa0] sm:$0xff] %vm161_vm2, %v3469_v11  ;;  %v3407_v44 = vmul.f32 %v6142_v24, %v3375_v13  ;;  %v3376_v17 = vadd.f32 %v3353_v16, %v6258_v56  ;;  %v4798_v19 = vpop.f32.mrb[119].mxu0 }
 0x8dc   :  { %v3443_v20 = vadd.f32 %v6148_v29, %v3407_v44  ;;  %v3409_v23 = vmul.f32 %v6142_v24, %v3376_v17 }
 0x8de   :  { %v3471_v4 = vmax.f32 %v3443_v20, 0.0  ;;  %v3445_v26 = vadd.f32 %v6148_v29, %v3409_v23 }
 0x8df   :  { %v3358_v22 = vpop.f32.mrb[120].mxu0 }
 0x8e0   :  { %3499 = vst.msk [vmem:[%s6378_s18 + $0xb0] sm:$0xff] %vm161_vm2, %v3471_v4  ;;  %v3473_v27 = vmax.f32 %v3445_v26, 0.0  ;;  %v3411_v39 = vmul.f32 %v6142_v24, %v3358_v22  ;;  %v4801_v28 = vpop.f32.mrb[121].mxu0 }
 0x8e1   :  { %v3361_v6 = vpop.f32.mrb[122].mxu0 }
 0x8e2   :  { %3501 = vst.msk [vmem:[%s6378_s18 + $0xc0] sm:$0xff] %vm161_vm2, %v3473_v27  ;;  %v3447_v56 = vadd.f32 %v6148_v29, %v3411_v39  ;;  %v4802_v30 = vpop.f32.mrb[123].mxu0 }
 0x8e4   :  { %v3475_v18 = vmax.f32 %v3447_v56, 0.0 }
 0x8e6   :  { %3503 = vst.msk [vmem:[%s6378_s18 + $0xd0] sm:$0xff] %vm161_vm2, %v3475_v18 }

</bundles_post_ra>
